<compile_context>
chip_gen: v5e
topology: v5e:2x2
jax: 0.10.0
libtpu: 0.0.40
codegen_flags: <defaults>
</compile_context>

<pallas_src>
import functools

import jax
import jax.numpy as jnp
from jax.experimental import pallas as pl
from jax.experimental.pallas import tpu as pltpu

HIDDEN = 512        # conv1_da output channels
TN_DEFAULT = 1024   # pixel-tile width (lanes); multiple of 128


def _da_img_head_kernel(x_ref, w1t_ref, b1_ref, w2_ref, b2_ref, o_ref):
    # x_ref:   (C, tn)     pixel tile: channels on sublanes, pixels on lanes
    # w1t_ref: (512, C)    conv1_da weight, (out, in) layout, bf16
    # b1_ref:  (512, 1)    conv1_da bias, f32
    # w2_ref:  (512, 1)    conv2_da weight, f32
    # b2_ref:  (1,)        conv2_da bias, SMEM scalar
    # o_ref:   (1, tn)     lane-dense per-pixel domain logits
    x = x_ref[...].astype(w1t_ref.dtype)          # one bf16 cast per tile
    t = jnp.dot(w1t_ref[...], x, preferred_element_type=jnp.float32)
    t = jnp.maximum(t + b1_ref[...], 0.0)         # ReLU, (512, tn)
    # Second 1x1 conv (512 -> 1): VPU multiply + hidden-axis reduce keeps the
    # MXU free and writes a lane-dense (1, tn) row.
    y = jnp.sum(t * w2_ref[...], axis=0, keepdims=True) + b2_ref[0]
    o_ref[...] = y.astype(o_ref.dtype)


@functools.partial(jax.jit, static_argnames=("tn",))
def _da_img_head_level(x_ncp, w1t, b1, w2, b2, *, tn):
    """x_ncp: (N, C, P) float32 view of one NCHW feature level."""
    N, C, P = x_ncp.shape
    grid = (N, pl.cdiv(P, tn))
    return pl.pallas_call(
        _da_img_head_kernel,
        out_shape=jax.ShapeDtypeStruct((N, 1, P), jnp.float32),
        grid_spec=pltpu.PrefetchScalarGridSpec(
            num_scalar_prefetch=0,
            grid=grid,
            in_specs=[
                # activation tile: leading batch dim squeezed out of the ref
                pl.BlockSpec((None, C, tn), lambda n, j: (n, 0, j)),
                # weights / bias: constant index_map -> DMA'd once, resident
                pl.BlockSpec((HIDDEN, C), lambda n, j: (0, 0)),
                pl.BlockSpec((HIDDEN, 1), lambda n, j: (0, 0)),
                pl.BlockSpec((HIDDEN, 1), lambda n, j: (0, 0)),
                # conv2 bias as an SMEM scalar (no padded VMEM tile)
                pl.BlockSpec(memory_space=pltpu.MemorySpace.SMEM),
            ],
            out_specs=pl.BlockSpec((None, 1, tn), lambda n, j: (n, 0, j)),
        ),
        compiler_params=pltpu.CompilerParams(
            dimension_semantics=("parallel", "parallel"),
            # explicit budget so tiles sized here stay safe on v7x (64 MiB
            # physical / 32 MiB scoped default per TC)
            vmem_limit_bytes=32 * 1024 * 1024,
        ),
    )(x_ncp, w1t, b1, w2, b2)


def da_img_head_forward(features, params, *, tn_max=TN_DEFAULT):
    """Apply DAImgHead to a list of NCHW feature maps.

    Returns a list of (N, 1, H, W) arrays (matching PyTorch output layout).
    No transposes / pads: NCHW -> (N, C, H*W) is a free reshape.
    """
    w1t, b1, w2, b2 = params
    outs = []
    for feat in features:
        N, C, H, W = feat.shape
        P = H * W
        x_ncp = feat.reshape(N, C, P)
        # Small levels: single full-extent block (block dim == array dim).
        # Large levels: 128-aligned tiles; ragged tails are masked by Pallas.
        tn = P if P <= tn_max else tn_max
        y = _da_img_head_level(x_ncp, w1t, b1, w2, b2, tn=tn)
        outs.append(y.reshape(N, 1, H, W))
    return outs


def init_da_img_head_params(key, in_channels, compute_dtype=jnp.bfloat16):
    """Matches PyTorch init: normal_(std=0.001) weights, zero biases.

    conv1 weight stored as (512, C) (PyTorch (out, in, 1, 1) squeezed) in
    bf16 for the MXU; conv2 weight as (512, 1) f32 (used on the VPU); biases
    in f32.
    """
    k1, k2 = jax.random.split(key)
    w1t = (jax.random.normal(k1, (HIDDEN, in_channels), jnp.float32)
           * 0.001).astype(compute_dtype)
    b1 = jnp.zeros((HIDDEN, 1), jnp.float32)
    w2 = jax.random.normal(k2, (HIDDEN, 1), jnp.float32) * 0.001
    b2 = jnp.zeros((1,), jnp.float32)
    return (w1t, b1, w2, b2)


def _reference(features, params):
    """Pure-JAX reference with the same precision policy (bf16 in, f32 acc)."""
    w1t, b1, w2, b2 = params
    outs = []
    for feat in features:
        N, C, H, W = feat.shape
        x = feat.reshape(N, C, H * W).astype(w1t.dtype)
        t = jnp.einsum("hc,ncp->nhp", w1t, x,
                       preferred_element_type=jnp.float32)
        t = jnp.maximum(t + b1[None], 0.0)
        y = jnp.sum(t * w2[None], axis=1, keepdims=True) + b2[0]
        outs.append(y.reshape(N, 1, H, W))
    return outs


if __name__ == "__main__":
    key = jax.random.PRNGKey(0)
    k_params, k_f1, k_f2 = jax.random.split(key, 3)

    in_channels = 4
    params = init_da_img_head_params(k_params, in_channels)

    # The module takes a *list* of feature maps (e.g. FPN levels), NCHW.
    x1 = jax.random.normal(k_f1, (2, in_channels, 16, 16), jnp.float32)
    x2 = jax.random.normal(k_f2, (2, in_channels, 8, 8), jnp.float32)
    features = [x1, x2]

    outs = da_img_head_forward(features, params)
    outs = [jax.block_until_ready(o) for o in outs]

    refs = _reference(features, params)
    for o, r in zip(outs, refs):
        assert o.shape == r.shape, (o.shape, r.shape)
        assert jnp.allclose(o, r, rtol=1e-2, atol=1e-6), "mismatch vs reference"

    print("KERNEL_OK")
</pallas_src>

<mosaic_0001>
module attributes {stable_mosaic.version = 11 : i64} {
  func.func @_da_img_head_kernel(%arg0: i32, %arg1: i32, %arg2: memref<1x4x256xf32, #tpu.memory_space<vmem>>, %arg3: memref<512x4xbf16, #tpu.memory_space<vmem>>, %arg4: memref<512x1xf32, #tpu.memory_space<vmem>>, %arg5: memref<512x1xf32, #tpu.memory_space<vmem>>, %arg6: memref<1xf32, #tpu.memory_space<smem>>, %arg7: memref<1x1x256xf32, #tpu.memory_space<vmem>>) attributes {dimension_semantics = [#tpu.dimension_semantics<parallel>, #tpu.dimension_semantics<parallel>], iteration_bounds = array<i64: 2, 1>, scalar_prefetch = 0 : i64, scratch_operands = 0 : i64, tpu.core_type = #tpu.core_type<tc>, window_params = [{transform_indices = @transform_0, window_bounds = array<i64: 1, 4, 256>}, {pipeline_mode = #tpu.pipeline_mode<synchronous>, transform_indices = @transform_1, window_bounds = array<i64: 512, 4>}, {pipeline_mode = #tpu.pipeline_mode<synchronous>, transform_indices = @transform_2, window_bounds = array<i64: 512, 1>}, {pipeline_mode = #tpu.pipeline_mode<synchronous>, transform_indices = @transform_3, window_bounds = array<i64: 512, 1>}, {transform_indices = @transform_4, window_bounds = array<i64: 1>}, {transform_indices = @transform_5, window_bounds = array<i64: 1, 1, 256>}]} {
    %c0 = arith.constant 0 : index
    %c0_0 = arith.constant 0 : index
    %c0_1 = arith.constant 0 : index
    %0 = vector.load %arg2[%c0, %c0_0, %c0_1] : memref<1x4x256xf32, #tpu.memory_space<vmem>>, vector<1x4x256xf32>
    %1 = vector.shape_cast %0 : vector<1x4x256xf32> to vector<4x256xf32>
    %2 = arith.truncf %1 : vector<4x256xf32> to vector<4x256xbf16>
    %c0_2 = arith.constant 0 : index
    %c0_3 = arith.constant 0 : index
    %3 = vector.load %arg3[%c0_2, %c0_3] : memref<512x4xbf16, #tpu.memory_space<vmem>>, vector<512x4xbf16>
    %cst = arith.constant dense<0.000000e+00> : vector<512x256xf32>
    %4 = tpu.matmul %3, %2, %cst {dimension_numbers = #tpu.dot_dimension_numbers<[1], [0], [0], [1], [0, 0, 1, 1], [], []>} : vector<512x4xbf16>, vector<4x256xbf16>, vector<512x256xf32> -> vector<512x256xf32>
    %c0_4 = arith.constant 0 : index
    %c0_5 = arith.constant 0 : index
    %5 = vector.load %arg4[%c0_4, %c0_5] : memref<512x1xf32, #tpu.memory_space<vmem>>, vector<512x1xf32>
    %6 = vector.broadcast %5 : vector<512x1xf32> to vector<512x256xf32>
    %7 = arith.addf %4, %6 : vector<512x256xf32>
    %cst_6 = arith.constant 0.000000e+00 : f32
    %8 = vector.broadcast %cst_6 : f32 to vector<512x256xf32>
    %9 = arith.maximumf %7, %8 : vector<512x256xf32>
    %c0_7 = arith.constant 0 : index
    %c0_8 = arith.constant 0 : index
    %10 = vector.load %arg5[%c0_7, %c0_8] : memref<512x1xf32, #tpu.memory_space<vmem>>, vector<512x1xf32>
    %11 = vector.broadcast %10 : vector<512x1xf32> to vector<512x256xf32>
    %12 = arith.mulf %9, %11 : vector<512x256xf32>
    %cst_9 = arith.constant dense<0.000000e+00> : vector<256xf32>
    %13 = vector.multi_reduction <add>, %12, %cst_9 [0] : vector<512x256xf32> to vector<256xf32>
    %14 = vector.shape_cast %13 : vector<256xf32> to vector<1x256xf32>
    %c0_10 = arith.constant 0 : index
    %15 = memref.load %arg6[%c0_10] : memref<1xf32, #tpu.memory_space<smem>>
    %16 = vector.broadcast %15 : f32 to vector<1x256xf32>
    %17 = arith.addf %14, %16 : vector<1x256xf32>
    %c0_11 = arith.constant 0 : index
    %c0_12 = arith.constant 0 : index
    %c0_13 = arith.constant 0 : index
    %18 = vector.load %arg7[%c0_11, %c0_12, %c0_13] : memref<1x1x256xf32, #tpu.memory_space<vmem>>, vector<1x1x256xf32>
    %19 = vector.shape_cast %18 : vector<1x1x256xf32> to vector<1x256xf32>
    %20 = vector.shape_cast %17 : vector<1x256xf32> to vector<1x1x256xf32>
    tpu.vector_store %arg7[%c0_11, %c0_12, %c0_13], %20 {strides = array<i32>} : memref<1x1x256xf32, #tpu.memory_space<vmem>>, vector<1x1x256xf32>,
    return
  }
  func.func @transform_0(%arg0: i32, %arg1: i32) -> (i32, i32, i32) {
    %c0_i32 = arith.constant 0 : i32
    %c0_i32_0 = arith.constant 0 : i32
    return %arg0, %c0_i32, %arg1 : i32, i32, i32
  }
  func.func @transform_1(%arg0: i32, %arg1: i32) -> (i32, i32) {
    %c0_i32 = arith.constant 0 : i32
    %c0_i32_0 = arith.constant 0 : i32
    %c0_i32_1 = arith.constant 0 : i32
    return %c0_i32, %c0_i32_0 : i32, i32
  }
  func.func @transform_2(%arg0: i32, %arg1: i32) -> (i32, i32) {
    %c0_i32 = arith.constant 0 : i32
    %c0_i32_0 = arith.constant 0 : i32
    %c0_i32_1 = arith.constant 0 : i32
    return %c0_i32, %c0_i32_0 : i32, i32
  }
  func.func @transform_3(%arg0: i32, %arg1: i32) -> (i32, i32) {
    %c0_i32 = arith.constant 0 : i32
    %c0_i32_0 = arith.constant 0 : i32
    %c0_i32_1 = arith.constant 0 : i32
    return %c0_i32, %c0_i32_0 : i32, i32
  }
  func.func @transform_4(%arg0: i32, %arg1: i32) -> i32 {
    %c0_i32 = arith.constant 0 : i32
    %c0_i32_0 = arith.constant 0 : i32
    return %c0_i32 : i32
  }
  func.func @transform_5(%arg0: i32, %arg1: i32) -> (i32, i32, i32) {
    %c0_i32 = arith.constant 0 : i32
    %c0_i32_0 = arith.constant 0 : i32
    return %arg0, %c0_i32, %arg1 : i32, i32, i32
  }
}

</mosaic_0001>

<bundles_post_ra>
// kernel: _da_img_head_level.1
= control target key start
LH: loop header
LB: loop body
LE: loop exit
PB: predicated region body
PF: predicated region fallthrough
CT: control target
= control target key end

     0   :  { %s3948_s0 = inlined_call_operand.vmem [shape: f32[2,4,256], index: 0, kind: input, shape index: {}]   ;;  %s3949_s1 = inlined_call_operand.vmem [shape: bf16[512,4], index: 1, kind: input, shape index: {}]   ;;  %s3950_s2 = inlined_call_operand.vmem [shape: f32[512,1], index: 2, kind: input, shape index: {}]   ;;  %s3951_s3 = inlined_call_operand.vmem [shape: f32[512,1], index: 3, kind: input, shape index: {}]   ;;  %s3952_s4 = inlined_call_operand.<no memory space> [shape: f32[1], index: 4, kind: input, shape index: {}]   ;;  %s3953_s5 = inlined_call_operand.hbm [shape: f32[2,1,256], index: 5, kind: output, shape index: {}]  }
   0x1   :  { %10 = sst [smem:[#allocation2]] %s3952_s4 }
   0x2   :  { %11 = vsyncpa [#allocation4], 0 }
   0x3   :  { %13 = vsyncpa [#allocation4 + $0x1], 0  ;;  %s2613_s20 = smov 0   ;;  %s2615_s21 = smov 0  }
   0x4   :  { %s2617_s22 = smov 0   ;;  %s2619_s23 = smov 0  }
   0x5   :  { %s2621_s24 = smov 0   ;;  %s2623_s25 = smov 0  }
   0x6 LB: > { %s2201_s4 = sadd.s32 4294967295, %s2577_s25   ;;  %s2202_s26 = sadd.s32 4294967294, %s2577_s25   ;;  %s2577_s25 = sphi %s2623_s25, %s19_s25   ;;  %s2573_s24 = sphi %s2621_s24, %s4121_s24   ;;  %s2569_s23 = sphi %s2619_s23, %s4120_s23   ;;  %s2565_s22 = sphi %s2617_s22, %s4119_s22   ;;  %s2561_s21 = sphi %s2615_s21, %s4118_s21   ;;  %s2557_s20 = sphi %s2613_s20, %s4117_s20  }
   0x7   : > { %s31_s27 = sadd.s32 1, %s2573_s24  ;;  %s152_s28 = sadd.s32 1, %s2565_s22 }
   0x8   : > { %p33_p0 = scmp.ge.s32.totalorder %s31_s27, 2  ;;  %p162_p1 = scmp.ne.s32.totalorder %s2565_s22, %s2561_s21 }
   0x9   : > { %p163_p2 = scmp.eq.s32.totalorder %s2201_s4, 1  ;;  %p168_p3 = scmp.ne.s32.totalorder %s2561_s21, %s2557_s20 }
   0xa   : > { %s4123_s27 = smov (%p33_p0, %s31_s27), 0  ;;  %p169_p5 = scmp.eq.s32.totalorder %s2202_s26, 1 }
   0xb   : > { %p2653_p4 = por %p163_p2, %p162_p1  ;;  %s147_s30 = ssub.s32 %s2573_s24, %s4123_s27 }
   0xc   : > { %p2205_p6 = scmp.ge.s32.totalorder %s2577_s25, 1  ;;  %p150_p7 = scmp.eq.s32.totalorder %s147_s30, 0 }
   0xd   : > { %p2660_p8 = por %p169_p5, %p168_p3  ;;  %p212_p9 = scmp.lt.s32.totalorder %s2577_s25, 3 }
   0xe   : > { %s2666_s7 = scalar_select %p150_p7, %s2565_s22, %s152_s28  }
   0xf   : > { %p213_p10 = pnand %p2205_p6, %p212_p9 }
  0x11   : > { %216 = sbr.rel (%p213_p10) target bundleno = 511 (0x1ff), region = 40 }
  0x16   : > { %v333_v0 = vld [vmem:[%s3950_s2 + $0x20] sm:$0xff]  ;;  %v331_v1 = vld [vmem:[%s3950_s2 + $0x10] sm:$0xff]  ;;  %p245_p11 = scmp.lt.s32.totalorder %s2569_s23, 1  ;;  %v2579_v3 = vmov 0   ;;  %v334_v5 = vld [vmem:[%s3950_s2 + $0x28] sm:$0xff]  ;;  %vm970_vm0 = vcmask 1041408  }
  0x17   : > { %v329_v2 = vld [vmem:[%s3950_s2] sm:$0xff]  ;;  %2498 = vset.pattern.permute.xlu2 %v2579_v3  ;;  %2497 = vset.pattern.permute.xlu1 %v2579_v3  ;;  %v332_v6 = vld [vmem:[%s3950_s2 + $0x18] sm:$0xff]  ;;  %v330_v7 = vld [vmem:[%s3950_s2 + $0x8] sm:$0xff]  ;;  %vm873_vm1 = vcmask 31744   ;;  %s2093_s13 = sld [smem:[#allocation2]]  ;;  %s2402_s16 = sshll.u32 %s2569_s23, 1 }
  0x18   : > { %2496 = vset.pattern.permute.xlu0 %v2579_v3  ;;  %415 = vperm.xlu2 %2498, %v333_v0   ;;  %s246_s14 = scalar_select %p245_p11, %s2569_s23, 1  ;;  %v337_v10 = vld [vmem:[%s3950_s2 + $0x40] sm:$0xff]  ;;  %v336_v13 = vld [vmem:[%s3950_s2 + $0x38] sm:$0xff]  ;;  %v335_v14 = vld [vmem:[%s3950_s2 + $0x30] sm:$0xff]  ;;  %vm2100_vm2 = vcmask 1040384  }
  0x19   : > { %405 = vperm.xlu1 %2497, %v331_v1   ;;  %395 = vperm.xlu0 %2496, %v329_v2   ;;  %v2406_v17 = vld [vmem:[%s3949_s1] sm:$0xff]  ;;  %v340_v19 = vld [vmem:[%s3950_s2 + $0x58] sm:$0xff]  ;;  %v339_v20 = vld [vmem:[%s3950_s2 + $0x50] sm:$0xff]  ;;  %s2121_s19 = scalar_lea.hbm %s3953_s5, %s2402_s16  ;;  %s2519_s11 = scalar_lea.hbm %s3953_s5, 4 }
  0x1a   : > { %s2405_s15 = sshll.u32 %s246_s14, 3  ;;  %v2422_v18 = vld [vmem:[%s3949_s1 + $0x80] sm:$0xff]  ;;  %v338_v21 = vld [vmem:[%s3950_s2 + $0x48] sm:$0xff]  ;;  %v343_v22 = vld [vmem:[%s3950_s2 + $0x70] sm:$0xff]  ;;  %s241_s14 = sand.u32 1, %s2561_s21  }
  0x1b   : > { %s252_s18 = scalar_lea.vmem %s3948_s0, %s2405_s15  ;;  %v342_v23 = vld [vmem:[%s3950_s2 + $0x68] sm:$0xff]  ;;  %v341_v24 = vld [vmem:[%s3950_s2 + $0x60] sm:$0xff]  ;;  %v344_v29 = vld [vmem:[%s3950_s2 + $0x78] sm:$0xff]  ;;  %s2206_s15 = sshll.u32 %s241_s14, 1 }
  0x1c   : > { %v256_v4 = vld [vmem:[%s252_s18] sm:$0xff]  ;;  %v2407_v25 = vld [vmem:[%s3949_s1 + $0x8] sm:$0xff]  ;;  %v348_v31 = vld [vmem:[%s3950_s2 + $0x98] sm:$0xff]  ;;  %s243_s4 = scalar_lea.vmem [#allocation3], %s2206_s15  ;;  %s2125_s28 = sshll.u32 %s2121_s19, 4  ;;  %s2126_s28 = int_to_ptr.hbm [resolvable:$true] %s2125_s28 }
  0x1d   : > { %258 = vst [vmem:[#allocation1] ss:$2 sm:$0xff] %v256_v4  ;;  %v2423_v26 = vld [vmem:[%s3949_s1 + $0x88] sm:$0xff]  ;;  %v345_v28 = vld [vmem:[%s3950_s2 + $0x80] sm:$0xff]  ;;  %v347_v32 = vld [vmem:[%s3950_s2 + $0x90] sm:$0xff]  ;;  %s2123_s26 = sshll.u32 %s243_s4, 4  ;;  %s2124_s26 = int_to_ptr.vmem [resolvable:$true] %s2123_s26 }
  0x1e   : > { %v346_v27 = vld [vmem:[%s3950_s2 + $0x88] sm:$0xff]  ;;  %v349_v30 = vld [vmem:[%s3950_s2 + $0xa0] sm:$0xff]  ;;  %v2408_v33 = vld [vmem:[%s3949_s1 + $0x10] sm:$0xff]  ;;  %s2109_s23 = scalar_lea.sflag [#allocation4], %s241_s14  ;;  %s2513_s30 = sshra.s32 %s2126_s28, 4  ;;  %s2514_s30 = int_to_ptr.hbm [resolvable:$true] %s2513_s30 }
  0x1f   : > { %v2424_v34 = vld [vmem:[%s3949_s1 + $0x90] sm:$0xff]  ;;  %v352_v35 = vld [vmem:[%s3950_s2 + $0xb8] sm:$0xff]  ;;  %v350_v37 = vld [vmem:[%s3950_s2 + $0xa8] sm:$0xff]  ;;  %s2515_s8 = scalar_lea.hbm %s2514_s30, 2  ;;  %p2520_p1 = scmp.lt.s32.totalorder %s2514_s30, %s3953_s5 }
  0x20   : > { %420 = vperm.xlu2 %2498, %v334_v5   ;;  %v351_v36 = vld [vmem:[%s3950_s2 + $0xb0] sm:$0xff]  ;;  %v354_v39 = vld [vmem:[%s3950_s2 + $0xc8] sm:$0xff]  ;;  %v353_v40 = vld [vmem:[%s3950_s2 + $0xc0] sm:$0xff]  ;;  %p2516_p12 = scmp.ne.s32.totalorder %s2514_s30, %s2515_s8  ;;  %p2521_p2 = scmp.lt.s32.totalorder %s2519_s11, %s2515_s8 }
  0x21   : > { %410 = vperm.xlu1 %2497, %v332_v6   ;;  %400 = vperm.xlu0 %2496, %v330_v7   ;;  %v355_v38 = vld [vmem:[%s3950_s2 + $0xd0] sm:$0xff]  ;;  %v2409_v41 = vld [vmem:[%s3949_s1 + $0x18] sm:$0xff]  ;;  %v358_v43 = vld [vmem:[%s3950_s2 + $0xe8] sm:$0xff] }
  0x22   : > { %v2425_v42 = vld [vmem:[%s3949_s1 + $0x98] sm:$0xff]  ;;  %v357_v44 = vld [vmem:[%s3950_s2 + $0xe0] sm:$0xff]  ;;  %v359_v48 = vld [vmem:[%s3950_s2 + $0xf0] sm:$0xff]  ;;  %p2517_p13 = pnand %p2516_p12, %p2653_p4  ;;  %p2522_p3 = por %p2521_p2, %p2520_p1 }
  0x23   : > { %v356_v45 = vld [vmem:[%s3950_s2 + $0xd8] sm:$0xff]  ;;  %v361_v46 = vld [vmem:[%s3950_s2 + $0x100] sm:$0xff]  ;;  %v363_v52 = vld [vmem:[%s3950_s2 + $0x110] sm:$0xff] }
  0x24   : > { %v259_v8 = vld.sshfl [vmem:[#allocation1] sm:$0xff pattern:$0x75316420]  ;;  %v260_v9 = vld.sshfl [vmem:[#allocation1 + $0x8] sm:$0xff pattern:$0x75316420]  ;;  %p2518_p0 = pneg %p2517_p13 }
  0x25   : > { %v263_v11 = vpack.c.bf16 %v259_v8, %v259_v8  ;;  %v264_v12 = vpack.c.bf16 %v260_v9, %v260_v9  ;;  %v360_v47 = vld [vmem:[%s3950_s2 + $0xf8] sm:$0xff]  ;;  %v2410_v49 = vld [vmem:[%s3949_s1 + $0x20] sm:$0xff]  ;;  %v362_v53 = vld [vmem:[%s3950_s2 + $0x108] sm:$0xff] }
  0x26   : > { %v2426_v50 = vld [vmem:[%s3949_s1 + $0xa0] sm:$0xff]  ;;  %v364_v51 = vld [vmem:[%s3950_s2 + $0x118] sm:$0xff]  ;;  %v367_v55 = vld [vmem:[%s3950_s2 + $0x130] sm:$0xff]  ;;  %p2523_p5 = pnand %p2522_p3, %p2518_p0 }
  0x27   : > { %v972_v15 = vsel %vm970_vm0, %v263_v11, 0  ;;  %v975_v16 = vsel %vm970_vm0, %v264_v12, 0  ;;  %v366_v56 = vld [vmem:[%s3950_s2 + $0x128] sm:$0xff]  ;;  %v365_v57 = vld [vmem:[%s3950_s2 + $0x120] sm:$0xff]  ;;  %v368_v63 = vld [vmem:[%s3950_s2 + $0x138] sm:$0xff] }
  0x28   : > { %435 = vperm.xlu2 %2498, %v337_v10   ;;  %984 = vmatpush.bf16.msra.mxu0 %v972_v15  ;;  %v2411_v58 = vld [vmem:[%s3949_s1 + $0x28] sm:$0xff]  ;;  %v369_v62 = vld [vmem:[%s3950_s2 + $0x140] sm:$0xff]  ;;  %v372_v2 = vld [vmem:[%s3950_s2 + $0x158] sm:$0xff] }
  0x29   : > { %430 = vperm.xlu1 %2497, %v336_v13   ;;  %425 = vperm.xlu0 %2496, %v335_v14   ;;  %v2427_v59 = vld [vmem:[%s3949_s1 + $0xa8] sm:$0xff]  ;;  %v373_v1 = vld [vmem:[%s3950_s2 + $0x160] sm:$0xff]  ;;  %v371_v3 = vld [vmem:[%s3950_s2 + $0x150] sm:$0xff] }
  0x2a   : > { %2438 = vmatpush.bf16.msra.mxu2 %v972_v15  ;;  %1153 = vmatpush.bf16.msra.mxu1 %v975_v16  ;;  %v370_v61 = vld [vmem:[%s3950_s2 + $0x148] sm:$0xff]  ;;  %v2412_v4 = vld [vmem:[%s3949_s1 + $0x30] sm:$0xff]  ;;  %v376_v9 = vld [vmem:[%s3950_s2 + $0x178] sm:$0xff] }
  0x2b   : > { %2439 = vmatpush.bf16.msra.mxu3 %v975_v16  ;;  %2337 = vmatmul.msk.bf16.vlgmr.msra.gmra.mxu0 %vm873_vm1, %v2406_v17  ;;  %v2428_v5 = vld [vmem:[%s3949_s1 + $0xb0] sm:$0xff]  ;;  %v374_v11 = vld [vmem:[%s3950_s2 + $0x168] sm:$0xff] }
  0x2c   : > { %v375_v10 = vld [vmem:[%s3950_s2 + $0x170] sm:$0xff]  ;;  %v378_v16 = vld [vmem:[%s3950_s2 + $0x188] sm:$0xff] }
  0x2d   : > { %2353 = vmatmul.msk.bf16.vlgmr.msra.gmra.mxu2 %vm873_vm1, %v2422_v18  ;;  %2369 = vmatmul.msk.bf16.vlgmr.msra.gmra.mxu1 %vm873_vm1, %v2406_v17  ;;  %v379_v15 = vld [vmem:[%s3950_s2 + $0x190] sm:$0xff]  ;;  %v377_v17 = vld [vmem:[%s3950_s2 + $0x180] sm:$0xff] }
  0x2e   : > { %2385 = vmatmul.msk.bf16.vlgmr.msra.gmra.mxu3 %vm873_vm1, %v2422_v18  ;;  %v2413_v18 = vld [vmem:[%s3949_s1 + $0x38] sm:$0xff] }
  0x30   : > { %450 = vperm.xlu2 %2498, %v340_v19   ;;  %v2429_v19 = vld [vmem:[%s3949_s1 + $0xb8] sm:$0xff] }
  0x31   : > { %445 = vperm.xlu1 %2497, %v339_v20   ;;  %440 = vperm.xlu0 %2496, %v338_v21  }
  0x38   : > { %465 = vperm.xlu2 %2498, %v343_v22  }
  0x39   : > { %460 = vperm.xlu1 %2497, %v342_v23   ;;  %455 = vperm.xlu0 %2496, %v341_v24   ;;  %v382_v23 = vld [vmem:[%s3950_s2 + $0x1a8] sm:$0xff]  ;;  %v381_v24 = vld [vmem:[%s3950_s2 + $0x1a0] sm:$0xff] }
  0x3b   : > { %2338 = vmatmul.msk.bf16.gmra.mxu0 %vm873_vm1, %v2407_v25 }
  0x3d   : > { %2354 = vmatmul.msk.bf16.gmra.mxu2 %vm873_vm1, %v2423_v26  ;;  %2370 = vmatmul.msk.bf16.gmra.mxu1 %vm873_vm1, %v2407_v25  ;;  %v380_v25 = vld [vmem:[%s3950_s2 + $0x198] sm:$0xff] }
  0x3e   : > { %2386 = vmatmul.msk.bf16.gmra.mxu3 %vm873_vm1, %v2423_v26 }
  0x40   : > { %480 = vperm.xlu2 %2498, %v346_v27  }
  0x41   : > { %475 = vperm.xlu1 %2497, %v345_v28   ;;  %470 = vperm.xlu0 %2496, %v344_v29   ;;  %v385_v29 = vld [vmem:[%s3950_s2 + $0x1c0] sm:$0xff] }
  0x48   : > { %495 = vperm.xlu2 %2498, %v349_v30   ;;  %v384_v30 = vld [vmem:[%s3950_s2 + $0x1b8] sm:$0xff] }
  0x49   : > { %490 = vperm.xlu1 %2497, %v348_v31   ;;  %485 = vperm.xlu0 %2496, %v347_v32   ;;  %v383_v31 = vld [vmem:[%s3950_s2 + $0x1b0] sm:$0xff]  ;;  %v2414_v32 = vld [vmem:[%s3949_s1 + $0x40] sm:$0xff] }
  0x4b   : > { %2339 = vmatmul.msk.bf16.gmra.mxu0 %vm873_vm1, %v2408_v33 }
  0x4d   : > { %2355 = vmatmul.msk.bf16.gmra.mxu2 %vm873_vm1, %v2424_v34  ;;  %2371 = vmatmul.msk.bf16.gmra.mxu1 %vm873_vm1, %v2408_v33 }
  0x4e   : > { %2387 = vmatmul.msk.bf16.gmra.mxu3 %vm873_vm1, %v2424_v34 }
  0x50   : > { %510 = vperm.xlu2 %2498, %v352_v35   ;;  %v2430_v35 = vld [vmem:[%s3949_s1 + $0xc0] sm:$0xff] }
  0x51   : > { %505 = vperm.xlu1 %2497, %v351_v36   ;;  %500 = vperm.xlu0 %2496, %v350_v37  }
  0x58   : > { %525 = vperm.xlu2 %2498, %v355_v38  }
  0x59   : > { %520 = vperm.xlu1 %2497, %v354_v39   ;;  %515 = vperm.xlu0 %2496, %v353_v40  }
  0x5b   : > { %2340 = vmatmul.msk.bf16.gmra.mxu0 %vm873_vm1, %v2409_v41 }
  0x5d   : > { %2356 = vmatmul.msk.bf16.gmra.mxu2 %vm873_vm1, %v2425_v42  ;;  %2372 = vmatmul.msk.bf16.gmra.mxu1 %vm873_vm1, %v2409_v41  ;;  %v388_v41 = vld [vmem:[%s3950_s2 + $0x1d8] sm:$0xff] }
  0x5e   : > { %2388 = vmatmul.msk.bf16.gmra.mxu3 %vm873_vm1, %v2425_v42  ;;  %v387_v42 = vld [vmem:[%s3950_s2 + $0x1d0] sm:$0xff] }
  0x60   : > { %540 = vperm.xlu2 %2498, %v358_v43   ;;  %v386_v43 = vld [vmem:[%s3950_s2 + $0x1c8] sm:$0xff] }
  0x61   : > { %535 = vperm.xlu1 %2497, %v357_v44   ;;  %530 = vperm.xlu0 %2496, %v356_v45  }
  0x68   : > { %555 = vperm.xlu2 %2498, %v361_v46  }
  0x69   : > { %550 = vperm.xlu1 %2497, %v360_v47   ;;  %545 = vperm.xlu0 %2496, %v359_v48  }
  0x6b   : > { %2341 = vmatmul.msk.bf16.gmra.mxu0 %vm873_vm1, %v2410_v49 }
  0x6d   : > { %2357 = vmatmul.msk.bf16.gmra.mxu2 %vm873_vm1, %v2426_v50  ;;  %2373 = vmatmul.msk.bf16.gmra.mxu1 %vm873_vm1, %v2410_v49 }
  0x6e   : > { %2389 = vmatmul.msk.bf16.gmra.mxu3 %vm873_vm1, %v2426_v50 }
  0x70   : > { %570 = vperm.xlu2 %2498, %v364_v51  }
  0x71   : > { %565 = vperm.xlu1 %2497, %v363_v52   ;;  %560 = vperm.xlu0 %2496, %v362_v53   ;;  %v391_v53 = vld [vmem:[%s3950_s2 + $0x1f0] sm:$0xff] }
  0x72   : > { %v2831_v54 = vpop.permute.xlu2 %415 }
  0x78   : > { %585 = vperm.xlu2 %2498, %v367_v55   ;;  %v390_v55 = vld [vmem:[%s3950_s2 + $0x1e8] sm:$0xff] }
  0x79   : > { %580 = vperm.xlu1 %2497, %v366_v56   ;;  %575 = vperm.xlu0 %2496, %v365_v57   ;;  %v389_v56 = vld [vmem:[%s3950_s2 + $0x1e0] sm:$0xff]  ;;  %v2415_v57 = vld [vmem:[%s3949_s1 + $0x48] sm:$0xff] }
  0x7a   : > { %v2848_v60 = vpop.permute.xlu2 %420 }
  0x7b   : > { %2342 = vmatmul.msk.bf16.gmra.mxu0 %vm873_vm1, %v2411_v58 }
  0x7d   : > { %2358 = vmatmul.msk.bf16.gmra.mxu2 %vm873_vm1, %v2427_v59  ;;  %2374 = vmatmul.msk.bf16.gmra.mxu1 %vm873_vm1, %v2411_v58 }
  0x7e   : > { %2390 = vmatmul.msk.bf16.gmra.mxu3 %vm873_vm1, %v2427_v59 }
  0x80   : > { %600 = vperm.xlu2 %2498, %v370_v61  }
  0x81   : > { %595 = vperm.xlu1 %2497, %v369_v62   ;;  %590 = vperm.xlu0 %2496, %v368_v63   ;;  %v2431_v63 = vld [vmem:[%s3949_s1 + $0xc8] sm:$0xff] }
  0x82   : > { %v2863_v0 = vpop.permute.xlu2 %435 }
  0x88   : > { %615 = vperm.xlu2 %2498, %v373_v1  }
  0x89   : > { %610 = vperm.xlu1 %2497, %v372_v2   ;;  %605 = vperm.xlu0 %2496, %v371_v3  }
  0x8a   : > { %v2880_v6 = vpop.permute.xlu2 %450 }
  0x8b   : > { %v2882_v7 = vpop.permute.xlu1 %405  ;;  %v396_v8 = vpop.permute.xlu0 %395  ;;  %2343 = vmatmul.msk.bf16.gmra.mxu0 %vm873_vm1, %v2412_v4 }
  0x8d   : > { %2359 = vmatmul.msk.bf16.gmra.mxu2 %vm873_vm1, %v2428_v5  ;;  %2375 = vmatmul.msk.bf16.gmra.mxu1 %vm873_vm1, %v2412_v4 }
  0x8e   : > { %2391 = vmatmul.msk.bf16.gmra.mxu3 %vm873_vm1, %v2428_v5 }
  0x90   : > { %630 = vperm.xlu2 %2498, %v376_v9   ;;  %v392_v9 = vld [vmem:[%s3950_s2 + $0x1f8] sm:$0xff] }
  0x91   : > { %625 = vperm.xlu1 %2497, %v375_v10   ;;  %620 = vperm.xlu0 %2496, %v374_v11  }
  0x92   : > { %v2897_v12 = vpop.permute.xlu2 %465 }
  0x93   : > { %v2899_v13 = vpop.permute.xlu1 %410  ;;  %v401_v14 = vpop.permute.xlu0 %400 }
  0x98   : > { %645 = vperm.xlu2 %2498, %v379_v15  }
  0x99   : > { %640 = vperm.xlu1 %2497, %v378_v16   ;;  %635 = vperm.xlu0 %2496, %v377_v17  }
  0x9a   : > { %v2916_v20 = vpop.permute.xlu2 %480 }
  0x9b   : > { %3983 = vst [vmem:[#allocation6_spill] sm:$0xff] %v2916_v20  ;;  %v2918_v21 = vpop.permute.xlu1 %430  ;;  %v2920_v22 = vpop.permute.xlu0 %425  ;;  %2344 = vmatmul.msk.bf16.gmra.mxu0 %vm873_vm1, %v2413_v18 }
  0x9d   : > { %2360 = vmatmul.msk.bf16.gmra.mxu2 %vm873_vm1, %v2429_v19  ;;  %2376 = vmatmul.msk.bf16.gmra.mxu1 %vm873_vm1, %v2413_v18 }
  0x9e   : > { %2392 = vmatmul.msk.bf16.gmra.mxu3 %vm873_vm1, %v2429_v19 }
  0xa0   : > { %660 = vperm.xlu2 %2498, %v382_v23  }
  0xa1   : > { %655 = vperm.xlu1 %2497, %v381_v24   ;;  %650 = vperm.xlu0 %2496, %v380_v25  }
  0xa2   : > { %v2935_v26 = vpop.permute.xlu2 %495 }
  0xa3   : > { %3984 = vst [vmem:[#allocation7_spill] sm:$0xff] %v2935_v26  ;;  %v2937_v27 = vpop.permute.xlu1 %445  ;;  %v2939_v28 = vpop.permute.xlu0 %440 }
  0xa8   : > { %675 = vperm.xlu2 %2498, %v385_v29   ;;  %v986_v33 = vpop.f32.mrf.mxu0  ;;  %v1447_v29 = vld [vmem:[%s3951_s3 + $0x20] sm:$0xff] }
  0xa9   : > { %670 = vperm.xlu1 %2497, %v384_v30   ;;  %665 = vperm.xlu0 %2496, %v383_v31   ;;  %v2953_v34 = vadd.f32 %v986_v33, %v396_v8  ;;  %v1446_v30 = vld [vmem:[%s3951_s3 + $0x18] sm:$0xff]  ;;  %v2416_v31 = vld [vmem:[%s3949_s1 + $0x50] sm:$0xff] }
  0xaa   : > { %v1155_v36 = vpop.f32.mrf.mxu1  ;;  %v2958_v37 = vpop.permute.xlu2 %510 }
  0xab   : > { %3985 = vst [vmem:[#allocation8_spill] sm:$0xff] %v2958_v37  ;;  %v2960_v38 = vadd.f32 %v1155_v36, %v396_v8  ;;  %v2962_v39 = vpop.permute.xlu1 %460  ;;  %v2964_v40 = vpop.permute.xlu0 %455  ;;  %2345 = vmatmul.msk.bf16.gmra.mxu0 %vm873_vm1, %v2414_v32  ;;  %v1444_v8 = vld [vmem:[%s3951_s3 + $0x8] sm:$0xff]  ;;  %v2432_v36 = vld [vmem:[%s3949_s1 + $0xd0] sm:$0xff] }
  0xad   : > { %2361 = vmatmul.msk.bf16.gmra.mxu2 %vm873_vm1, %v2430_v35  ;;  %2377 = vmatmul.msk.bf16.gmra.mxu1 %vm873_vm1, %v2414_v32 }
  0xae   : > { %2393 = vmatmul.msk.bf16.gmra.mxu3 %vm873_vm1, %v2430_v35 }
  0xb0   : > { %v1066_v44 = vpop.f32.mrf.mxu2  ;;  %690 = vperm.xlu2 %2498, %v388_v41   ;;  %v988_v45 = vpop.f32.mrf.mxu0 }
  0xb1   : > { %v1235_v46 = vpop.f32.mrf.mxu3  ;;  %685 = vperm.xlu1 %2497, %v387_v42   ;;  %680 = vperm.xlu0 %2496, %v386_v43   ;;  %v2979_v47 = vadd.f32 %v988_v45, %v401_v14 }
  0xb2   : > { %v1157_v48 = vpop.f32.mrf.mxu1  ;;  %v2981_v49 = vpop.permute.xlu2 %525 }
  0xb3   : > { %3986 = vst [vmem:[#allocation9_spill] sm:$0xff] %v2981_v49  ;;  %v2983_v50 = vadd.f32 %v1157_v48, %v401_v14  ;;  %v2985_v51 = vpop.permute.xlu1 %475  ;;  %v2987_v52 = vpop.permute.xlu0 %470  ;;  %v1450_v48 = vld [vmem:[%s3951_s3 + $0x38] sm:$0xff] }
  0xb8   : > { %v3001_v58 = vpop.f32.mrf.mxu2  ;;  %705 = vperm.xlu2 %2498, %v391_v53   ;;  %v991_v59 = vpop.f32.mrf.mxu0  ;;  %v1449_v53 = vld [vmem:[%s3951_s3 + $0x30] sm:$0xff] }
  0xb9   : > { %v3003_v61 = vpop.f32.mrf.mxu3  ;;  %700 = vperm.xlu1 %2497, %v390_v55   ;;  %695 = vperm.xlu0 %2496, %v389_v56   ;;  %v3006_v62 = vadd.f32 %v991_v59, %v2882_v7  ;;  %v1448_v55 = vld [vmem:[%s3951_s3 + $0x28] sm:$0xff] }
  0xba   : > { %v1160_v1 = vpop.f32.mrf.mxu1  ;;  %v3011_v2 = vpop.permute.xlu2 %540 }
  0xbb   : > { %3987 = vst [vmem:[#allocation10_spill] sm:$0xff] %v3011_v2  ;;  %v3014_v3 = vadd.f32 %v1160_v1, %v2882_v7  ;;  %v3016_v4 = vpop.permute.xlu1 %490  ;;  %v3018_v5 = vpop.permute.xlu0 %485  ;;  %2346 = vmatmul.msk.bf16.gmra.mxu0 %vm873_vm1, %v2415_v57  ;;  %v1443_v7 = vld [vmem:[%s3951_s3] sm:$0xff] }
  0xbc   : > { %3988 = vst [vmem:[#allocation11_spill] sm:$0xff] %v3016_v4 }
  0xbd   : > { %3989 = vst [vmem:[#allocation12_spill] sm:$0xff] %v3018_v5  ;;  %2362 = vmatmul.msk.bf16.gmra.mxu2 %vm873_vm1, %v2431_v63  ;;  %2378 = vmatmul.msk.bf16.gmra.mxu1 %vm873_vm1, %v2415_v57  ;;  %v1318_v5 = vmax.f32 %v2983_v50, 0.0 }
  0xbe   : > { %2394 = vmatmul.msk.bf16.gmra.mxu3 %vm873_vm1, %v2431_v63 }
  0xc0   : > { %v3033_v10 = vpop.f32.mrf.mxu2  ;;  %1514 = vperm.xlu2 %2498, %v1444_v8   ;;  %v993_v11 = vpop.f32.mrf.mxu0 }
  0xc1   : > { %v3035_v14 = vpop.f32.mrf.mxu3  ;;  %1509 = vperm.xlu1 %2497, %v1443_v7   ;;  %710 = vperm.xlu0 %2496, %v392_v9   ;;  %v3038_v15 = vadd.f32 %v993_v11, %v2899_v13  ;;  %v1453_v9 = vld [vmem:[%s3951_s3 + $0x50] sm:$0xff]  ;;  %v1452_v11 = vld [vmem:[%s3951_s3 + $0x48] sm:$0xff] }
  0xc2   : > { %v1162_v16 = vpop.f32.mrf.mxu1  ;;  %v556_v17 = vpop.permute.xlu2 %555 }
  0xc3   : > { %v3041_v18 = vadd.f32 %v1162_v16, %v2899_v13  ;;  %v3043_v19 = vadd.f32 %v1066_v44, %v556_v17  ;;  %v3045_v23 = vadd.f32 %v1235_v46, %v556_v17  ;;  %v3047_v24 = vpop.permute.xlu1 %505  ;;  %v3049_v25 = vpop.permute.xlu0 %500  ;;  %v1445_v13 = vld [vmem:[%s3951_s3 + $0x10] sm:$0xff]  ;;  %v1451_v16 = vld [vmem:[%s3951_s3 + $0x40] sm:$0xff]  ;;  %v2417_v17 = vld [vmem:[%s3949_s1 + $0x58] sm:$0xff] }
  0xc4   : > { %3992 = vst [vmem:[#allocation15_spill] sm:$0xff] %v3047_v24 }
  0xc5   : > { %3990 = vst [vmem:[#allocation13_spill] sm:$0xff] %v3043_v19 }
  0xc6   : > { %3991 = vst [vmem:[#allocation14_spill] sm:$0xff] %v3045_v23 }
  0xc7   : > { %3993 = vst [vmem:[#allocation16_spill] sm:$0xff] %v3049_v25 }
  0xc8   : > { %v1073_v32 = vpop.f32.mrf.mxu2  ;;  %1529 = vperm.xlu2 %2498, %v1447_v29   ;;  %v3063_v33 = vpop.f32.mrf.mxu0 }
  0xc9   : > { %v1242_v35 = vpop.f32.mrf.mxu3  ;;  %1524 = vperm.xlu1 %2497, %v1446_v30   ;;  %1519 = vperm.xlu0 %2496, %v1445_v13  }
  0xca   : > { %v3068_v41 = vpop.f32.mrf.mxu1  ;;  %v571_v42 = vpop.permute.xlu2 %570 }
  0xcb   : > { %v3070_v43 = vadd.f32 %v1073_v32, %v571_v42  ;;  %v3072_v44 = vadd.f32 %v1242_v35, %v571_v42  ;;  %v3074_v45 = vpop.permute.xlu1 %520  ;;  %v3076_v46 = vpop.permute.xlu0 %515  ;;  %2347 = vmatmul.msk.bf16.gmra.mxu0 %vm873_vm1, %v2416_v31  ;;  %v2433_v32 = vld [vmem:[%s3949_s1 + $0xd8] sm:$0xff] }
  0xcc   : > { %3996 = vst [vmem:[#allocation19_spill] sm:$0xff] %v3074_v45 }
  0xcd   : > { %3994 = vst [vmem:[#allocation17_spill] sm:$0xff] %v3070_v43  ;;  %2363 = vmatmul.msk.bf16.gmra.mxu2 %vm873_vm1, %v2432_v36  ;;  %2379 = vmatmul.msk.bf16.gmra.mxu1 %vm873_vm1, %v2416_v31 }
  0xce   : > { %3995 = vst [vmem:[#allocation18_spill] sm:$0xff] %v3072_v44  ;;  %2395 = vmatmul.msk.bf16.gmra.mxu3 %vm873_vm1, %v2432_v36 }
  0xcf   : > { %3997 = vst [vmem:[#allocation20_spill] sm:$0xff] %v3076_v46 }
  0xd0   : > { %v3091_v56 = vpop.f32.mrf.mxu2  ;;  %1544 = vperm.xlu2 %2498, %v1450_v48   ;;  %v3093_v57 = vpop.f32.mrf.mxu0 }
  0xd1   : > { %v3095_v59 = vpop.f32.mrf.mxu3  ;;  %1539 = vperm.xlu1 %2497, %v1449_v53   ;;  %1534 = vperm.xlu0 %2496, %v1448_v55   ;;  %v1456_v55 = vld [vmem:[%s3951_s3 + $0x68] sm:$0xff] }
  0xd2   : > { %v3097_v63 = vpop.f32.mrf.mxu1  ;;  %v586_v1 = vpop.permute.xlu2 %585 }
  0xd3   : > { %v3099_v8 = vpop.permute.xlu1 %535  ;;  %v3101_v7 = vpop.permute.xlu0 %530 }
  0xd4   : > { %3998 = vst [vmem:[#allocation21_spill] sm:$0xff] %v3099_v8 }
  0xd5   : > { %3999 = vst [vmem:[#allocation22_spill] sm:$0xff] %v3101_v7 }
  0xd8   : > { %v1078_v29 = vpop.f32.mrf.mxu2  ;;  %1559 = vperm.xlu2 %2498, %v1453_v9   ;;  %v1001_v30 = vpop.f32.mrf.mxu0  ;;  %v1454_v9 = vld [vmem:[%s3951_s3 + $0x58] sm:$0xff] }
  0xd9   : > { %v1247_v13 = vpop.f32.mrf.mxu3  ;;  %1554 = vperm.xlu1 %2497, %v1452_v11   ;;  %1549 = vperm.xlu0 %2496, %v1451_v16   ;;  %v3116_v31 = vadd.f32 %v1001_v30, %v2920_v22 }
  0xda   : > { %v1170_v35 = vpop.f32.mrf.mxu1  ;;  %v3121_v36 = vpop.permute.xlu2 %600 }
  0xdb   : > { %v3124_v42 = vadd.f32 %v1170_v35, %v2920_v22  ;;  %v3126_v48 = vpop.permute.xlu1 %550  ;;  %v3128_v53 = vpop.permute.xlu0 %545  ;;  %2348 = vmatmul.msk.bf16.gmra.mxu0 %vm873_vm1, %v2417_v17  ;;  %v1455_v22 = vld [vmem:[%s3951_s3 + $0x60] sm:$0xff] }
  0xdc   : > { %4000 = vst [vmem:[#allocation23_spill] sm:$0xff] %v3126_v48 }
  0xdd   : > { %4001 = vst [vmem:[#allocation24_spill] sm:$0xff] %v3128_v53  ;;  %2364 = vmatmul.msk.bf16.gmra.mxu2 %vm873_vm1, %v2433_v32  ;;  %2380 = vmatmul.msk.bf16.gmra.mxu1 %vm873_vm1, %v2417_v17 }
  0xde   : > { %2396 = vmatmul.msk.bf16.gmra.mxu3 %vm873_vm1, %v2433_v32 }
  0xe0   : > { %v1081_v11 = vpop.f32.mrf.mxu2  ;;  %1574 = vperm.xlu2 %2498, %v1456_v55   ;;  %v1003_v16 = vpop.f32.mrf.mxu0 }
  0xe1   : > { %v3143_v30 = vadd.f32 %v1081_v11, %v586_v1  ;;  %v1250_v17 = vpop.f32.mrf.mxu3  ;;  %1569 = vperm.xlu1 %2497, %v1455_v22   ;;  %1564 = vperm.xlu0 %2496, %v1454_v9   ;;  %v3146_v35 = vadd.f32 %v1003_v16, %v2918_v21  ;;  %v1459_v9 = vld [vmem:[%s3951_s3 + $0x80] sm:$0xff] }
  0xe2   : > { %v3148_v32 = vadd.f32 %v1250_v17, %v586_v1  ;;  %v1172_v44 = vpop.f32.mrf.mxu1  ;;  %v3150_v43 = vpop.permute.xlu2 %615 }
  0xe3   : > { %4002 = vst [vmem:[#allocation25_spill] sm:$0xff] %v3143_v30  ;;  %v3153_v23 = vadd.f32 %v1172_v44, %v2918_v21  ;;  %v566_v19 = vpop.permute.xlu1 %565  ;;  %v561_v48 = vpop.permute.xlu0 %560  ;;  %v1458_v21 = vld [vmem:[%s3951_s3 + $0x78] sm:$0xff]  ;;  %v2434_v44 = vld [vmem:[%s3949_s1 + $0xe0] sm:$0xff] }
  0xe4   : > { %4003 = vst [vmem:[#allocation26_spill] sm:$0xff] %v3148_v32  ;;  %v3156_v55 = vadd.f32 %v3033_v10, %v566_v19  ;;  %v3159_v11 = vadd.f32 %v3035_v14, %v566_v19  ;;  %v3162_v22 = vadd.f32 %v3001_v58, %v561_v48  ;;  %v3165_v1 = vadd.f32 %v3003_v61, %v561_v48  ;;  %v1457_v10 = vld [vmem:[%s3951_s3 + $0x70] sm:$0xff]  ;;  %v2418_v58 = vld [vmem:[%s3949_s1 + $0x60] sm:$0xff] }
  0xe6   : > { %4004 = vst [vmem:[#allocation27_spill] sm:$0xff] %v3156_v55 }
  0xe7   : > { %4005 = vst [vmem:[#allocation28_spill] sm:$0xff] %v3159_v11 }
  0xe8   : > { %4006 = vst [vmem:[#allocation29_spill] sm:$0xff] %v3162_v22  ;;  %v1083_v14 = vpop.f32.mrf.mxu2  ;;  %1589 = vperm.xlu2 %2498, %v1459_v9   ;;  %v3179_v61 = vpop.f32.mrf.mxu0 }
  0xe9   : > { %4007 = vst [vmem:[#allocation30_spill] sm:$0xff] %v3165_v1  ;;  %v1252_v19 = vpop.f32.mrf.mxu3  ;;  %1584 = vperm.xlu1 %2497, %v1458_v21   ;;  %1579 = vperm.xlu0 %2496, %v1457_v10   ;;  %v1462_v10 = vld [vmem:[%s3951_s3 + $0x98] sm:$0xff] }
  0xea   : > { %v3184_v48 = vpop.f32.mrf.mxu1  ;;  %v3186_v16 = vpop.permute.xlu2 %630 }
  0xeb   : > { %v581_v17 = vpop.permute.xlu1 %580  ;;  %v576_v32 = vpop.permute.xlu0 %575  ;;  %2349 = vmatmul.msk.bf16.gmra.mxu0 %vm873_vm1, %v2418_v58 }
  0xec   : > { %v3189_v30 = vadd.f32 %v1078_v29, %v581_v17  ;;  %v3191_v9 = vadd.f32 %v1247_v13, %v581_v17  ;;  %v3194_v11 = vadd.f32 %v3091_v56, %v576_v32  ;;  %v3197_v21 = vadd.f32 %v3095_v59, %v576_v32  ;;  %v1461_v29 = vld [vmem:[%s3951_s3 + $0x90] sm:$0xff]  ;;  %v1460_v56 = vld [vmem:[%s3951_s3 + $0x88] sm:$0xff] }
  0xed   : > { %2365 = vmatmul.msk.bf16.gmra.mxu2 %vm873_vm1, %v2434_v44  ;;  %2381 = vmatmul.msk.bf16.gmra.mxu1 %vm873_vm1, %v2418_v58 }
  0xee   : > { %4008 = vst [vmem:[#allocation31_spill] sm:$0xff] %v3189_v30  ;;  %2397 = vmatmul.msk.bf16.gmra.mxu3 %vm873_vm1, %v2434_v44 }
  0xef   : > { %4009 = vst [vmem:[#allocation32_spill] sm:$0xff] %v3191_v9 }
  0xf0   : > { %4010 = vst [vmem:[#allocation33_spill] sm:$0xff] %v3194_v11  ;;  %v1086_v59 = vpop.f32.mrf.mxu2  ;;  %1604 = vperm.xlu2 %2498, %v1462_v10   ;;  %v3211_v13 = vpop.f32.mrf.mxu0  ;;  %v1465_v10 = vld [vmem:[%s3951_s3 + $0xb0] sm:$0xff] }
  0xf1   : > { %4011 = vst [vmem:[#allocation34_spill] sm:$0xff] %v3197_v21  ;;  %v1255_v32 = vpop.f32.mrf.mxu3  ;;  %1599 = vperm.xlu1 %2497, %v1461_v29   ;;  %1594 = vperm.xlu0 %2496, %v1460_v56   ;;  %v1464_v29 = vld [vmem:[%s3951_s3 + $0xa8] sm:$0xff]  ;;  %v1463_v56 = vld [vmem:[%s3951_s3 + $0xa0] sm:$0xff] }
  0xf2   : > { %v3213_v58 = vpop.f32.mrf.mxu1  ;;  %v3215_v17 = vpop.permute.xlu2 %645 }
  0xf3   : > { %4012 = vst [vmem:[#allocation35_spill] sm:$0xff] %v3215_v17  ;;  %v596_v44 = vpop.permute.xlu1 %595  ;;  %v591_v9 = vpop.permute.xlu0 %590 }
  0xf4   : > { %v3217_v21 = vadd.f32 %v1086_v59, %v596_v44  ;;  %v3219_v30 = vadd.f32 %v1255_v32, %v596_v44  ;;  %v3221_v11 = vadd.f32 %v1083_v14, %v591_v9  ;;  %v3223_v1 = vadd.f32 %v1252_v19, %v591_v9  ;;  %v2419_v59 = vld [vmem:[%s3949_s1 + $0x68] sm:$0xff] }
  0xf5   : > { %v2435_v44 = vld [vmem:[%s3949_s1 + $0xe8] sm:$0xff] }
  0xf6   : > { %4013 = vst [vmem:[#allocation36_spill] sm:$0xff] %v3217_v21 }
  0xf7   : > { %4014 = vst [vmem:[#allocation37_spill] sm:$0xff] %v3219_v30 }
  0xf8   : > { %4015 = vst [vmem:[#allocation38_spill] sm:$0xff] %v3221_v11  ;;  %v1088_v14 = vpop.f32.mrf.mxu2  ;;  %1619 = vperm.xlu2 %2498, %v1465_v10   ;;  %v3237_v19 = vpop.f32.mrf.mxu0 }
  0xf9   : > { %4016 = vst [vmem:[#allocation39_spill] sm:$0xff] %v3223_v1  ;;  %v3240_v9 = vadd.f32 %v1088_v14, %v3121_v36  ;;  %v1257_v32 = vpop.f32.mrf.mxu3  ;;  %1614 = vperm.xlu1 %2497, %v1464_v29   ;;  %1609 = vperm.xlu0 %2496, %v1463_v56   ;;  %v1468_v29 = vld [vmem:[%s3951_s3 + $0xc8] sm:$0xff]  ;;  %v1466_v56 = vld [vmem:[%s3951_s3 + $0xb8] sm:$0xff] }
  0xfa   : > { %v3246_v17 = vadd.f32 %v1257_v32, %v3121_v36  ;;  %v3248_v30 = vpop.f32.mrf.mxu1  ;;  %v3250_v1 = vpop.permute.xlu2 %660  ;;  %v1467_v36 = vld [vmem:[%s3951_s3 + $0xc0] sm:$0xff] }
  0xfb   : > { %4017 = vst [vmem:[#allocation40_spill] sm:$0xff] %v3240_v9  ;;  %v611_v10 = vpop.permute.xlu1 %610  ;;  %v606_v21 = vpop.permute.xlu0 %605  ;;  %2350 = vmatmul.msk.bf16.gmra.mxu0 %vm873_vm1, %v2419_v59 }
  0xfc   : > { %4018 = vst [vmem:[#allocation41_spill] sm:$0xff] %v3246_v17 }
  0xfd   : > { %4019 = vst [vmem:[#allocation42_spill] sm:$0xff] %v3250_v1  ;;  %2366 = vmatmul.msk.bf16.gmra.mxu2 %vm873_vm1, %v2435_v44  ;;  %2382 = vmatmul.msk.bf16.gmra.mxu1 %vm873_vm1, %v2419_v59 }
  0xfe   : > { %2398 = vmatmul.msk.bf16.gmra.mxu3 %vm873_vm1, %v2435_v44 }
 0x100   : > { %v1091_v14 = vpop.f32.mrf.mxu2  ;;  %1634 = vperm.xlu2 %2498, %v1468_v29   ;;  %v3265_v32 = vpop.f32.mrf.mxu0  ;;  %v1471_v29 = vld [vmem:[%s3951_s3 + $0xe0] sm:$0xff] }
 0x101   : > { %v3267_v1 = vadd.f32 %v1091_v14, %v606_v21  ;;  %v1260_v59 = vpop.f32.mrf.mxu3  ;;  %1629 = vperm.xlu1 %2497, %v1467_v36   ;;  %1624 = vperm.xlu0 %2496, %v1466_v56   ;;  %v1470_v14 = vld [vmem:[%s3951_s3 + $0xd8] sm:$0xff]  ;;  %v2420_v36 = vld [vmem:[%s3949_s1 + $0x70] sm:$0xff] }
 0x102   : > { %v3269_v17 = vadd.f32 %v1260_v59, %v606_v21  ;;  %v3271_v44 = vpop.f32.mrf.mxu1  ;;  %v3273_v9 = vpop.permute.xlu2 %675  ;;  %v1469_v21 = vld [vmem:[%s3951_s3 + $0xd0] sm:$0xff] }
 0x103   : > { %4020 = vst [vmem:[#allocation43_spill] sm:$0xff] %v3267_v1  ;;  %v3275_v11 = vpop.permute.xlu1 %625  ;;  %v621_v55 = vpop.permute.xlu0 %620  ;;  %v2436_v1 = vld [vmem:[%s3949_s1 + $0xf0] sm:$0xff] }
 0x104   : > { %4021 = vst [vmem:[#allocation44_spill] sm:$0xff] %v3269_v17 }
 0x105   : > { %4022 = vst [vmem:[#allocation45_spill] sm:$0xff] %v3273_v9 }
 0x108   : > { %v1093_v56 = vpop.f32.mrf.mxu2  ;;  %1649 = vperm.xlu2 %2498, %v1471_v29   ;;  %v3289_v59 = vpop.f32.mrf.mxu0 }
 0x109   : > { %v3291_v9 = vadd.f32 %v1093_v56, %v611_v10  ;;  %v1262_v17 = vpop.f32.mrf.mxu3  ;;  %1644 = vperm.xlu1 %2497, %v1470_v14   ;;  %1639 = vperm.xlu0 %2496, %v1469_v21   ;;  %v1474_v14 = vld [vmem:[%s3951_s3 + $0xf8] sm:$0xff] }
 0x10a   : > { %v3296_v22 = vadd.f32 %v1262_v17, %v611_v10  ;;  %v3298_v53 = vpop.f32.mrf.mxu1  ;;  %v3300_v2 = vpop.permute.xlu2 %690  ;;  %v1473_v17 = vld [vmem:[%s3951_s3 + $0xf0] sm:$0xff]  ;;  %v1472_v10 = vld [vmem:[%s3951_s3 + $0xe8] sm:$0xff] }
 0x10b   : > { %4023 = vst [vmem:[#allocation46_spill] sm:$0xff] %v3291_v9  ;;  %v3302_v8 = vpop.permute.xlu1 %640  ;;  %v3304_v29 = vpop.permute.xlu0 %635  ;;  %2351 = vmatmul.msk.bf16.gmra.mxu0 %vm873_vm1, %v2420_v36 }
 0x10c   : > { %4024 = vst [vmem:[#allocation47_spill] sm:$0xff] %v3296_v22 }
 0x10d   : > { %4025 = vst [vmem:[#allocation48_spill] sm:$0xff] %v3300_v2  ;;  %2367 = vmatmul.msk.bf16.gmra.mxu2 %vm873_vm1, %v2436_v1  ;;  %2383 = vmatmul.msk.bf16.gmra.mxu1 %vm873_vm1, %v2420_v36 }
 0x10e   : > { %2399 = vmatmul.msk.bf16.gmra.mxu3 %vm873_vm1, %v2436_v1 }
 0x110   : > { %v1096_v21 = vpop.f32.mrf.mxu2  ;;  %1664 = vperm.xlu2 %2498, %v1474_v14   ;;  %v3319_v56 = vpop.f32.mrf.mxu0  ;;  %v1477_v14 = vld [vmem:[%s3951_s3 + $0x110] sm:$0xff] }
 0x111   : > { %v3322_v36 = vadd.f32 %v1096_v21, %v3150_v43  ;;  %v1265_v2 = vpop.f32.mrf.mxu3  ;;  %1659 = vperm.xlu1 %2497, %v1473_v17   ;;  %1654 = vperm.xlu0 %2496, %v1472_v10   ;;  %v1476_v17 = vld [vmem:[%s3951_s3 + $0x108] sm:$0xff] }
 0x112   : > { %v3325_v1 = vadd.f32 %v1265_v2, %v3150_v43  ;;  %v3327_v22 = vpop.f32.mrf.mxu1  ;;  %v3329_v9 = vpop.permute.xlu2 %705  ;;  %v1475_v2 = vld [vmem:[%s3951_s3 + $0x100] sm:$0xff]  ;;  %v2421_v43 = vld [vmem:[%s3949_s1 + $0x78] sm:$0xff] }
 0x113   : > { %4026 = vst [vmem:[#allocation49_spill] sm:$0xff] %v3322_v36  ;;  %v3331_v7 = vpop.permute.xlu1 %655  ;;  %v3333_v49 = vpop.permute.xlu0 %650  ;;  %v2437_v36 = vld [vmem:[%s3949_s1 + $0xf8] sm:$0xff] }
 0x114   : > { %4027 = vst [vmem:[#allocation50_spill] sm:$0xff] %v3325_v1 }
 0x115   : > { %4028 = vst [vmem:[#allocation51_spill] sm:$0xff] %v3329_v9 }
 0x118   : > { %v1098_v10 = vpop.f32.mrf.mxu2  ;;  %1679 = vperm.xlu2 %2498, %v1477_v14   ;;  %v3347_v21 = vpop.f32.mrf.mxu0  ;;  %v1480_v14 = vld [vmem:[%s3951_s3 + $0x128] sm:$0xff] }
 0x119   : > { %v3349_v9 = vadd.f32 %v1098_v10, %v621_v55  ;;  %v1267_v1 = vpop.f32.mrf.mxu3  ;;  %1674 = vperm.xlu1 %2497, %v1476_v17   ;;  %1669 = vperm.xlu0 %2496, %v1475_v2  }
 0x11a   : > { %v3354_v45 = vadd.f32 %v1267_v1, %v621_v55  ;;  %v3356_v46 = vpop.f32.mrf.mxu1  ;;  %v1515_v37 = vpop.permute.xlu2 %1514  ;;  %v1479_v55 = vld [vmem:[%s3951_s3 + $0x120] sm:$0xff]  ;;  %v1478_v1 = vld [vmem:[%s3951_s3 + $0x118] sm:$0xff] }
 0x11b   : > { %4029 = vst [vmem:[#allocation52_spill] sm:$0xff] %v3349_v9  ;;  %v3358_v24 = vpop.permute.xlu1 %670  ;;  %v3360_v25 = vpop.permute.xlu0 %665  ;;  %2352 = vmatmul.msk.bf16.gmra.mxu0 %vm873_vm1, %v2421_v43 }
 0x11c   : > { %4030 = vst [vmem:[#allocation53_spill] sm:$0xff] %v3354_v45 }
 0x11d   : > { %4031 = vst [vmem:[#allocation54_spill] sm:$0xff] %v3358_v24  ;;  %2368 = vmatmul.msk.bf16.gmra.mxu2 %vm873_vm1, %v2437_v36  ;;  %2384 = vmatmul.msk.bf16.gmra.mxu1 %vm873_vm1, %v2421_v43 }
 0x11e   : > { %4032 = vst [vmem:[#allocation55_spill] sm:$0xff] %v3360_v25  ;;  %2400 = vmatmul.msk.bf16.gmra.mxu3 %vm873_vm1, %v2437_v36 }
 0x120   : > { %v1101_v17 = vpop.f32.mrf.mxu2  ;;  %1694 = vperm.xlu2 %2498, %v1480_v14   ;;  %v3375_v2 = vpop.f32.mrf.mxu0  ;;  %v1483_v14 = vld [vmem:[%s3951_s3 + $0x140] sm:$0xff] }
 0x121   : > { %v3378_v43 = vadd.f32 %v1101_v17, %v3275_v11  ;;  %v1270_v10 = vpop.f32.mrf.mxu3  ;;  %1689 = vperm.xlu1 %2497, %v1479_v55   ;;  %1684 = vperm.xlu0 %2496, %v1478_v1   ;;  %v1482_v55 = vld [vmem:[%s3951_s3 + $0x138] sm:$0xff] }
 0x122   : > { %v3381_v36 = vadd.f32 %v1270_v10, %v3275_v11  ;;  %v3383_v24 = vpop.f32.mrf.mxu1  ;;  %v3385_v25 = vpop.permute.xlu2 %1529  ;;  %v1481_v11 = vld [vmem:[%s3951_s3 + $0x130] sm:$0xff] }
 0x123   : > { %4033 = vst [vmem:[#allocation56_spill] sm:$0xff] %v3378_v43  ;;  %v3387_v45 = vpop.permute.xlu1 %685  ;;  %v3389_v9 = vpop.permute.xlu0 %680 }
 0x124   : > { %4034 = vst [vmem:[#allocation57_spill] sm:$0xff] %v3381_v36 }
 0x125   : > { %4035 = vst [vmem:[#allocation58_spill] sm:$0xff] %v3387_v45 }
 0x126   : > { %4036 = vst [vmem:[#allocation59_spill] sm:$0xff] %v3389_v9 }
 0x128   : > { %v1103_v1 = vpop.f32.mrf.mxu2  ;;  %1709 = vperm.xlu2 %2498, %v1483_v14   ;;  %v3400_v17 = vpop.f32.mrf.mxu0  ;;  %v1486_v14 = vld [vmem:[%s3951_s3 + $0x158] sm:$0xff] }
 0x129   : > { %v3403_v10 = vadd.f32 %v1103_v1, %v3186_v16  ;;  %v1272_v45 = vpop.f32.mrf.mxu3  ;;  %1704 = vperm.xlu1 %2497, %v1482_v55   ;;  %1699 = vperm.xlu0 %2496, %v1481_v11   ;;  %v1485_v55 = vld [vmem:[%s3951_s3 + $0x150] sm:$0xff]  ;;  %v1315_v1 = vmax.f32 %v2953_v34, 0.0 }
 0x12a   : > { %v3406_v9 = vadd.f32 %v1272_v45, %v3186_v16  ;;  %v3408_v36 = vpop.f32.mrf.mxu1  ;;  %v3410_v43 = vpop.permute.xlu2 %1544  ;;  %v1484_v45 = vld [vmem:[%s3951_s3 + $0x148] sm:$0xff] }
 0x12b   : > { %4037 = vst [vmem:[#allocation60_spill] sm:$0xff] %v3403_v10  ;;  %v3412_v26 = vpop.permute.xlu1 %700  ;;  %v3414_v4 = vpop.permute.xlu0 %695  ;;  %v1317_v10 = vmax.f32 %v2979_v47, 0.0 }
 0x12c   : > { %4038 = vst [vmem:[#allocation61_spill] sm:$0xff] %v3406_v9  ;;  %v1316_v9 = vmax.f32 %v2960_v38, 0.0  ;;  %v1489_v38 = vld [vmem:[%s3951_s3 + $0x170] sm:$0xff] }
 0x12d   : > { %4039 = vst [vmem:[#allocation62_spill] sm:$0xff] %v3408_v36 }
 0x12e   : > { %4040 = vst [vmem:[#allocation63_spill] sm:$0xff] %v3412_v26 }
 0x12f   : > { %4041 = vst [vmem:[#allocation64_spill] sm:$0xff] %v3414_v4 }
 0x130   : > { %v1106_v16 = vpop.f32.mrf.mxu2  ;;  %1724 = vperm.xlu2 %2498, %v1486_v14   ;;  %v3425_v11 = vpop.f32.mrf.mxu0 }
 0x131   : > { %4042 = vst [vmem:[#allocation65_spill] sm:$0xff] %v3425_v11  ;;  %v3429_v26 = vadd.f32 %v1106_v16, %v3304_v29  ;;  %v1275_v4 = vpop.f32.mrf.mxu3  ;;  %1719 = vperm.xlu1 %2497, %v1485_v55   ;;  %1714 = vperm.xlu0 %2496, %v1484_v45   ;;  %v1829_v16 = vmul.f32 %v1515_v37, %v1317_v10 }
 0x132   : > { %v3435_v20 = vadd.f32 %v1275_v4, %v3304_v29  ;;  %v3437_v14 = vpop.f32.mrf.mxu1  ;;  %v3439_v11 = vpop.permute.xlu2 %1559  ;;  %v1488_v4 = vld [vmem:[%s3951_s3 + $0x168] sm:$0xff]  ;;  %v1487_v29 = vld [vmem:[%s3951_s3 + $0x160] sm:$0xff] }
 0x133   : > { %4043 = vst [vmem:[#allocation66_spill] sm:$0xff] %v3429_v26  ;;  %v1510_v34 = vpop.permute.xlu1 %1509  ;;  %v3441_v36 = vpop.permute.xlu0 %710  ;;  %v1830_v26 = vmul.f32 %v1515_v37, %v1318_v5 }
 0x134   : > { %4044 = vst [vmem:[#allocation67_spill] sm:$0xff] %v3435_v20  ;;  %v1827_v55 = vmul.f32 %v1510_v34, %v1315_v1  ;;  %v1828_v45 = vmul.f32 %v1510_v34, %v1316_v9  ;;  %v1319_v1 = vmax.f32 %v3006_v62, 0.0  ;;  %v1320_v34 = vmax.f32 %v3014_v3, 0.0 }
 0x135   : > { %4045 = vst [vmem:[#allocation68_spill] sm:$0xff] %v3441_v36  ;;  %v1166_v62 = vadd.f32 %v3068_v41, %v2831_v54  ;;  %v999_v3 = vadd.f32 %v3093_v57, %v2848_v60 }
 0x136   : > { %v1955_v47 = vadd.f32 %v1829_v16, %v1827_v55  ;;  %v2024_v50 = vadd.f32 %v1830_v26, %v1828_v45  ;;  %v1321_v45 = vmax.f32 %v3038_v15, 0.0  ;;  %v1168_v15 = vadd.f32 %v3097_v63, %v2848_v60 }
 0x138   : > { %v1108_v20 = vpop.f32.mrf.mxu2  ;;  %1739 = vperm.xlu2 %2498, %v1489_v38   ;;  %v3452_v10 = vpop.f32.mrf.mxu0  ;;  %v1322_v38 = vmax.f32 %v3041_v18, 0.0  ;;  %v1491_v18 = vld [vmem:[%s3951_s3 + $0x180] sm:$0xff] }
 0x139   : > { %4046 = vst [vmem:[#allocation69_spill] sm:$0xff] %v3452_v10  ;;  %v3455_v37 = vadd.f32 %v1108_v20, %v3302_v8  ;;  %v1277_v5 = vpop.f32.mrf.mxu3  ;;  %1734 = vperm.xlu1 %2497, %v1488_v4   ;;  %1729 = vperm.xlu0 %2496, %v1487_v29   ;;  %v997_v20 = vadd.f32 %v3063_v33, %v2831_v54  ;;  %v1490_v33 = vld [vmem:[%s3951_s3 + $0x178] sm:$0xff]  ;;  %v1325_v10 = vmax.f32 %v999_v3, 0.0 }
 0x13a   : > { %v3458_v26 = vadd.f32 %v1277_v5, %v3302_v8  ;;  %v3460_v9 = vpop.f32.mrf.mxu1  ;;  %v3468_v4 = vpop.permute.xlu2 %1574  ;;  %v1492_v5 = vld [vmem:[%s3951_s3 + $0x188] sm:$0xff]  ;;  %v1494_v3 = vld [vmem:[%s3951_s3 + $0x198] sm:$0xff] }
 0x13b   : > { %4047 = vst [vmem:[#allocation70_spill] sm:$0xff] %v3455_v37  ;;  %v1525_v16 = vpop.permute.xlu1 %1524  ;;  %v1520_v55 = vpop.permute.xlu0 %1519  ;;  %v1323_v41 = vmax.f32 %v997_v20, 0.0  ;;  %v1324_v37 = vmax.f32 %v1166_v62, 0.0  ;;  %v1328_v62 = vmax.f32 %v3124_v42, 0.0  ;;  %v1009_v42 = vadd.f32 %v3211_v13, %v2939_v28 }
 0x13c   : > { %4048 = vst [vmem:[#allocation71_spill] sm:$0xff] %v3458_v26  ;;  %v1831_v29 = vmul.f32 %v1520_v55, %v1319_v1  ;;  %v1832_v8 = vmul.f32 %v1520_v55, %v1320_v34  ;;  %v1833_v1 = vmul.f32 %v1525_v16, %v1321_v45  ;;  %v1834_v34 = vmul.f32 %v1525_v16, %v1322_v38 }
 0x13d   : > { %4049 = vst [vmem:[#allocation72_spill] sm:$0xff] %v3460_v9  ;;  %v1326_v45 = vmax.f32 %v1168_v15, 0.0  ;;  %v1836_v38 = vmul.f32 %v3385_v25, %v1324_v37  ;;  %v1178_v13 = vadd.f32 %v3213_v58, %v2939_v28  ;;  %v1181_v28 = vadd.f32 %v3248_v30, %v2937_v27 }
 0x13e   : > { %v1956_v55 = vadd.f32 %v1955_v47, %v1831_v29  ;;  %v2025_v36 = vadd.f32 %v2024_v50, %v1832_v8  ;;  %v1835_v47 = vmul.f32 %v3385_v25, %v1323_v41  ;;  %v1327_v29 = vmax.f32 %v3116_v31, 0.0  ;;  %v1493_v25 = vld [vmem:[%s3951_s3 + $0x190] sm:$0xff] }
 0x13f   : > { %v1007_v31 = vadd.f32 %v3179_v61, %v2863_v0 }
 0x140   : > { %v3485_v26 = vpop.f32.mrf.mxu2  ;;  %1754 = vperm.xlu2 %2498, %v1492_v5   ;;  %v3487_v54 = vpop.f32.mrf.mxu0  ;;  %v1957_v57 = vadd.f32 %v1956_v55, %v1833_v1  ;;  %v2026_v60 = vadd.f32 %v2025_v36, %v1834_v34  ;;  %v1495_v5 = vld [vmem:[%s3951_s3 + $0x1a0] sm:$0xff] }
 0x141   : > { %v3489_v63 = vpop.f32.mrf.mxu3  ;;  %1749 = vperm.xlu1 %2497, %v1491_v18   ;;  %1744 = vperm.xlu0 %2496, %v1490_v33  }
 0x142   : > { %v3491_v9 = vpop.f32.mrf.mxu1  ;;  %v1958_v36 = vadd.f32 %v1957_v57, %v1835_v47  ;;  %v2027_v18 = vadd.f32 %v2026_v60, %v1836_v38  ;;  %v3510_v37 = vpop.permute.xlu2 %1589  ;;  %v1329_v57 = vmax.f32 %v3146_v35, 0.0  ;;  %v1012_v38 = vadd.f32 %v3237_v19, %v2937_v27  ;;  %v1496_v27 = vld [vmem:[%s3951_s3 + $0x1a8] sm:$0xff] }
 0x143   : > { %v1540_v50 = vpop.permute.xlu1 %1539  ;;  %v1535_v16 = vpop.permute.xlu0 %1534  ;;  %v1014_v19 = vadd.f32 %v3265_v32, %v2880_v6  ;;  %v1186_v32 = vadd.f32 %v3298_v53, %v2964_v40 }
 0x144   : > { %v1837_v20 = vmul.f32 %v1535_v16, %v1325_v10  ;;  %v1838_v8 = vmul.f32 %v1535_v16, %v1326_v45  ;;  %v1176_v10 = vadd.f32 %v3184_v48, %v2863_v0  ;;  %v1839_v15 = vmul.f32 %v1540_v50, %v1327_v29 }
 0x145   : > { %v1840_v1 = vmul.f32 %v1540_v50, %v1328_v62  ;;  %v1330_v48 = vmax.f32 %v3153_v23, 0.0  ;;  %v1331_v16 = vmax.f32 %v1007_v31, 0.0  ;;  %v1841_v29 = vmul.f32 %v3410_v43, %v1329_v57  ;;  %v1498_v62 = vld [vmem:[%s3951_s3 + $0x1b8] sm:$0xff] }
 0x146   : > { %v1959_v33 = vadd.f32 %v1958_v36, %v1837_v20  ;;  %v2028_v34 = vadd.f32 %v2027_v18, %v1838_v8  ;;  %v1332_v35 = vmax.f32 %v1176_v10, 0.0  ;;  %v1333_v36 = vmax.f32 %v1009_v42, 0.0 }
 0x147   : > { %v1842_v23 = vmul.f32 %v3410_v43, %v1330_v48  ;;  %v1334_v18 = vmax.f32 %v1178_v13, 0.0  ;;  %v1335_v30 = vmax.f32 %v1012_v38, 0.0  ;;  %v1183_v43 = vadd.f32 %v3271_v44, %v2880_v6 }
 0x148   : > { %v1113_v55 = vpop.f32.mrf.mxu2  ;;  %1769 = vperm.xlu2 %2498, %v1495_v5   ;;  %v3514_v41 = vpop.f32.mrf.mxu0  ;;  %v1960_v60 = vadd.f32 %v1959_v33, %v1839_v15  ;;  %v2029_v45 = vadd.f32 %v2028_v34, %v1840_v1  ;;  %v1017_v15 = vadd.f32 %v3289_v59, %v2964_v40  ;;  %v1337_v59 = vmax.f32 %v1014_v19, 0.0 }
 0x149   : > { %v3518_v61 = vadd.f32 %v1113_v55, %v3333_v49  ;;  %v1282_v0 = vpop.f32.mrf.mxu3  ;;  %1764 = vperm.xlu1 %2497, %v1494_v3   ;;  %1759 = vperm.xlu0 %2496, %v1493_v25   ;;  %v1497_v25 = vld [vmem:[%s3951_s3 + $0x1b0] sm:$0xff]  ;;  %v1336_v55 = vmax.f32 %v1181_v28, 0.0  ;;  %v1847_v57 = vmul.f32 %v3439_v11, %v1335_v30  ;;  %v1019_v40 = vadd.f32 %v3319_v56, %v2962_v39 }
 0x14a   : > { %v3524_v47 = vadd.f32 %v1282_v0, %v3333_v49  ;;  %v3526_v50 = vpop.f32.mrf.mxu1  ;;  %v1961_v5 = vadd.f32 %v1960_v60, %v1841_v29  ;;  %v2030_v3 = vadd.f32 %v2029_v45, %v1842_v23  ;;  %v3559_v53 = vpop.permute.xlu2 %1604  ;;  %v1338_v45 = vmax.f32 %v1183_v43, 0.0 }
 0x14b   : > { %v1555_v20 = vpop.permute.xlu1 %1554  ;;  %v1550_v8 = vpop.permute.xlu0 %1549  ;;  %v1340_v56 = vmax.f32 %v1186_v32, 0.0  ;;  %v1193_v43 = vadd.f32 %v3383_v24, %v2987_v52 }
 0x14c   : > { %v1843_v58 = vmul.f32 %v1550_v8, %v1331_v16  ;;  %v1844_v49 = vmul.f32 %v1550_v8, %v1332_v35  ;;  %v1845_v31 = vmul.f32 %v1555_v20, %v1333_v36  ;;  %v1846_v33 = vmul.f32 %v1555_v20, %v1334_v18 }
 0x14d   : > { %v1188_v16 = vadd.f32 %v3327_v22, %v2962_v39  ;;  %v1848_v35 = vmul.f32 %v3439_v11, %v1336_v55  ;;  %v1339_v8 = vmax.f32 %v1017_v15, 0.0  ;;  %v1500_v22 = vld [vmem:[%s3951_s3 + $0x1c8] sm:$0xff]  ;;  %v1499_v11 = vld [vmem:[%s3951_s3 + $0x1c0] sm:$0xff]  ;;  %v1191_v18 = vadd.f32 %v3356_v46, %v2897_v12 }
 0x14e   : > { %v1962_v10 = vadd.f32 %v1961_v5, %v1843_v58  ;;  %v2031_v42 = vadd.f32 %v2030_v3, %v1844_v49  ;;  %v1341_v58 = vmax.f32 %v1019_v40, 0.0  ;;  %v1022_v49 = vadd.f32 %v3347_v21, %v2897_v12  ;;  %v4051_v40 = vld [vmem:[#allocation6_spill] sm:$0xff] }
 0x14f   : > { %v1027_v46 = vadd.f32 %v3400_v17, %v2985_v51  ;;  %v1344_v32 = vmax.f32 %v1191_v18, 0.0  ;;  %v1504_v17 = vld [vmem:[%s3951_s3 + $0x1e8] sm:$0xff] }
 0x150   : > { %v1116_v1 = vpop.f32.mrf.mxu2  ;;  %1784 = vperm.xlu2 %2498, %v1498_v62   ;;  %v3551_v34 = vpop.f32.mrf.mxu0  ;;  %v1963_v60 = vadd.f32 %v1962_v10, %v1845_v31  ;;  %v2032_v0 = vadd.f32 %v2031_v42, %v1846_v33  ;;  %v1342_v62 = vmax.f32 %v1188_v16, 0.0  ;;  %v1853_v21 = vmul.f32 %v3468_v4, %v1341_v58  ;;  %v4050_v33 = vld [vmem:[#allocation62_spill] sm:$0xff] }
 0x151   : > { %v3555_v6 = vadd.f32 %v1116_v1, %v3331_v7  ;;  %v1285_v44 = vpop.f32.mrf.mxu3  ;;  %1779 = vperm.xlu1 %2497, %v1497_v25   ;;  %1774 = vperm.xlu0 %2496, %v1496_v27   ;;  %v1024_v25 = vadd.f32 %v3375_v2, %v2987_v52  ;;  %v1343_v12 = vmax.f32 %v1022_v49, 0.0  ;;  %v1196_v42 = vadd.f32 %v4050_v33, %v2985_v51  ;;  %v1503_v51 = vld [vmem:[%s3951_s3 + $0x1e0] sm:$0xff] }
 0x152   : > { %v3562_v48 = vadd.f32 %v1285_v44, %v3331_v7  ;;  %v3564_v13 = vpop.f32.mrf.mxu1  ;;  %v1964_v20 = vadd.f32 %v1963_v60, %v1847_v57  ;;  %v2033_v28 = vadd.f32 %v2032_v0, %v1848_v35  ;;  %v1501_v7 = vld [vmem:[%s3951_s3 + $0x1d0] sm:$0xff]  ;;  %v1854_v31 = vmul.f32 %v3468_v4, %v1342_v62  ;;  %v3596_v24 = vpop.permute.xlu2 %1619  ;;  %v4052_v0 = vld [vmem:[#allocation65_spill] sm:$0xff] }
 0x153   : > { %v1570_v38 = vpop.permute.xlu1 %1569  ;;  %v1565_v29 = vpop.permute.xlu0 %1564  ;;  %v1345_v52 = vmax.f32 %v1024_v25, 0.0  ;;  %v1346_v60 = vmax.f32 %v1193_v43, 0.0  ;;  %v4056_v62 = vld [vmem:[#allocation11_spill] sm:$0xff] }
 0x154   : > { %v1849_v36 = vmul.f32 %v1565_v29, %v1337_v59  ;;  %v1850_v23 = vmul.f32 %v1565_v29, %v1338_v45  ;;  %v1851_v5 = vmul.f32 %v1570_v38, %v1339_v8  ;;  %v1852_v19 = vmul.f32 %v1570_v38, %v1340_v56  ;;  %v1502_v38 = vld [vmem:[%s3951_s3 + $0x1d8] sm:$0xff] }
 0x155   : > { %v1347_v59 = vmax.f32 %v1027_v46, 0.0  ;;  %v1029_v45 = vadd.f32 %v4052_v0, %v4051_v40  ;;  %v1348_v29 = vmax.f32 %v1196_v42, 0.0  ;;  %v4053_v56 = vld [vmem:[#allocation12_spill] sm:$0xff]  ;;  %v1034_v18 = vadd.f32 %v3487_v54, %v4056_v62 }
 0x156   : > { %v1965_v39 = vadd.f32 %v1964_v20, %v1849_v36  ;;  %v2034_v3 = vadd.f32 %v2033_v28, %v1850_v23  ;;  %v1198_v20 = vadd.f32 %v3437_v14, %v4051_v40  ;;  %v4054_v23 = vld [vmem:[#allocation69_spill] sm:$0xff] }
 0x157   : > { %v1032_v28 = vadd.f32 %v4054_v23, %v4053_v56  ;;  %v1349_v14 = vmax.f32 %v1029_v45, 0.0 }
 0x158   : > { %v1966_v27 = vadd.f32 %v1965_v39, %v1851_v5  ;;  %1799 = vperm.xlu2 %2498, %v1501_v7   ;;  %v3585_v30 = vpop.f32.mrf.mxu0  ;;  %v2035_v10 = vadd.f32 %v2034_v3, %v1852_v19  ;;  %v1859_v7 = vmul.f32 %v3510_v37, %v1347_v59  ;;  %v4055_v5 = vld [vmem:[#allocation72_spill] sm:$0xff]  ;;  %v1350_v25 = vmax.f32 %v1198_v20, 0.0 }
 0x159   : > { %1794 = vperm.xlu1 %2497, %v1500_v22   ;;  %1789 = vperm.xlu0 %2496, %v1499_v11   ;;  %v1201_v39 = vadd.f32 %v4055_v5, %v4053_v56  ;;  %v1860_v22 = vmul.f32 %v3510_v37, %v1348_v29  ;;  %v3645_v5 = vpop.f32.mrf.mxu3 }
 0x15a   : > { %v3592_v15 = vpop.f32.mrf.mxu1  ;;  %v1967_v2 = vadd.f32 %v1966_v27, %v1853_v21  ;;  %v2036_v57 = vadd.f32 %v2035_v10, %v1854_v31  ;;  %v1203_v21 = vadd.f32 %v3491_v9, %v4056_v62  ;;  %v1351_v10 = vmax.f32 %v1032_v28, 0.0  ;;  %v3627_v42 = vpop.permute.xlu2 %1634  ;;  %v1505_v9 = vld [vmem:[%s3951_s3 + $0x1f0] sm:$0xff] }
 0x15b   : > { %v1585_v1 = vpop.permute.xlu1 %1584  ;;  %v1580_v55 = vpop.permute.xlu0 %1579  ;;  %v1352_v37 = vmax.f32 %v1201_v39, 0.0 }
 0x15c   : > { %v1855_v4 = vmul.f32 %v1580_v55, %v1343_v12  ;;  %v1856_v44 = vmul.f32 %v1580_v55, %v1344_v32  ;;  %v1857_v16 = vmul.f32 %v1585_v1, %v1345_v52  ;;  %v1858_v8 = vmul.f32 %v1585_v1, %v1346_v60  ;;  %v4057_v32 = vld [vmem:[#allocation7_spill] sm:$0xff] }
 0x15d   : > { %v1037_v33 = vadd.f32 %v3514_v41, %v4057_v32  ;;  %v1506_v55 = vld [vmem:[%s3951_s3 + $0x1f8] sm:$0xff]  ;;  %v1206_v52 = vadd.f32 %v3526_v50, %v4057_v32 }
 0x15e   : > { %v1968_v35 = vadd.f32 %v1967_v2, %v1855_v4  ;;  %v2037_v36 = vadd.f32 %v2036_v57, %v1856_v44  ;;  %v1353_v2 = vmax.f32 %v1034_v18, 0.0  ;;  %v1354_v57 = vmax.f32 %v1203_v21, 0.0 }
 0x15f   : > { %v1355_v0 = vmax.f32 %v1037_v33, 0.0 }
 0x160   : > { %v1969_v58 = vadd.f32 %v1968_v35, %v1857_v16  ;;  %1814 = vperm.xlu2 %2498, %v1504_v17   ;;  %v3614_v49 = vpop.f32.mrf.mxu0  ;;  %v2038_v11 = vadd.f32 %v2037_v36, %v1858_v8  ;;  %v1865_v41 = vmul.f32 %v3559_v53, %v1353_v2  ;;  %v1866_v59 = vmul.f32 %v3559_v53, %v1354_v57 }
 0x161   : > { %1809 = vperm.xlu1 %2497, %v1503_v51   ;;  %1804 = vperm.xlu0 %2496, %v1502_v38   ;;  %v1356_v35 = vmax.f32 %v1206_v52, 0.0 }
 0x162   : > { %v3621_v19 = vpop.f32.mrf.mxu1  ;;  %v1970_v3 = vadd.f32 %v1969_v58, %v1859_v7  ;;  %v2039_v31 = vadd.f32 %v2038_v11, %v1860_v22  ;;  %v3639_v56 = vpop.permute.xlu2 %1649 }
 0x163   : > { %v1600_v27 = vpop.permute.xlu1 %1599  ;;  %v1595_v43 = vpop.permute.xlu0 %1594 }
 0x164   : > { %v1861_v12 = vmul.f32 %v1595_v43, %v1349_v14  ;;  %v1862_v46 = vmul.f32 %v1595_v43, %v1350_v25  ;;  %v1863_v54 = vmul.f32 %v1600_v27, %v1351_v10  ;;  %v1864_v4 = vmul.f32 %v1600_v27, %v1352_v37  ;;  %v3643_v58 = vpop.f32.mrf.mxu2  ;;  %v3655_v25 = vpop.f32.mrf.mxu3  ;;  %v4058_v10 = vld [vmem:[#allocation16_spill] sm:$0xff] }
 0x165   : > { %v1208_v37 = vadd.f32 %v3564_v13, %v4058_v10 }
 0x166   : > { %v1971_v1 = vadd.f32 %v1970_v3, %v1861_v12  ;;  %v2040_v60 = vadd.f32 %v2039_v31, %v1862_v46  ;;  %v1039_v12 = vadd.f32 %v3551_v34, %v4058_v10  ;;  %v4059_v46 = vld [vmem:[#allocation15_spill] sm:$0xff] }
 0x167   : > { %v1042_v2 = vadd.f32 %v3585_v30, %v4059_v46  ;;  %v1211_v32 = vadd.f32 %v3592_v15, %v4059_v46  ;;  %v4062_v10 = vld [vmem:[#allocation19_spill] sm:$0xff] }
 0x168   : > { %v1972_v44 = vadd.f32 %v1971_v1, %v1863_v54  ;;  %v1046_v17 = vpop.f32.mrf.mxu0  ;;  %v2041_v40 = vadd.f32 %v2040_v60, %v1864_v4  ;;  %v1357_v54 = vmax.f32 %v1039_v12, 0.0  ;;  %v4060_v1 = vld [vmem:[#allocation8_spill] sm:$0xff] }
 0x169   : > { %1824 = vperm.xlu1 %2497, %v1506_v55   ;;  %1819 = vperm.xlu0 %2496, %v1505_v9   ;;  %v1044_v55 = vadd.f32 %v3614_v49, %v4060_v1  ;;  %v1358_v9 = vmax.f32 %v1208_v37, 0.0  ;;  %v1213_v57 = vadd.f32 %v3621_v19, %v4060_v1  ;;  %v1359_v4 = vmax.f32 %v1042_v2, 0.0  ;;  %v4063_v2 = vld [vmem:[#allocation9_spill] sm:$0xff] }
 0x16a   : > { %v1215_v45 = vpop.f32.mrf.mxu1  ;;  %v1973_v16 = vadd.f32 %v1972_v44, %v1865_v41  ;;  %v2042_v29 = vadd.f32 %v2041_v40, %v1866_v59  ;;  %v3647_v22 = vpop.permute.xlu2 %1664  ;;  %v1360_v41 = vmax.f32 %v1211_v32, 0.0 }
 0x16b   : > { %v1615_v51 = vpop.permute.xlu1 %1614  ;;  %v1610_v38 = vpop.permute.xlu0 %1609  ;;  %v1361_v59 = vmax.f32 %v1044_v55, 0.0  ;;  %v1362_v49 = vmax.f32 %v1213_v57, 0.0  ;;  %v1871_v19 = vmul.f32 %v3596_v24, %v1359_v4 }
 0x16c   : > { %v1867_v20 = vmul.f32 %v1610_v38, %v1355_v0  ;;  %v1868_v50 = vmul.f32 %v1610_v38, %v1356_v35  ;;  %v3653_v18 = vpop.f32.mrf.mxu2  ;;  %v1869_v13 = vmul.f32 %v1615_v51, %v1357_v54  ;;  %v3681_v15 = vpop.f32.mrf.mxu3  ;;  %v1870_v44 = vmul.f32 %v1615_v51, %v1358_v9  ;;  %v4061_v35 = vld [vmem:[#allocation20_spill] sm:$0xff]  ;;  %v4064_v9 = vld [vmem:[#allocation22_spill] sm:$0xff] }
 0x16d   : > { %v1047_v38 = vadd.f32 %v1046_v17, %v4061_v35 }
 0x16e   : > { %v1974_v8 = vadd.f32 %v1973_v16, %v1867_v20  ;;  %v2043_v36 = vadd.f32 %v2042_v29, %v1868_v50  ;;  %v1872_v20 = vmul.f32 %v3596_v24, %v1360_v41  ;;  %v1216_v50 = vadd.f32 %v1215_v45, %v4061_v35 }
 0x16f   : > { %v1363_v55 = vmax.f32 %v1047_v38, 0.0  ;;  %v4066_v38 = vld [vmem:[#allocation10_spill] sm:$0xff] }
 0x170   : > { %v1048_v23 = vpop.f32.mrf.mxu0  ;;  %v1975_v40 = vadd.f32 %v1974_v8, %v1869_v13  ;;  %v2044_v0 = vadd.f32 %v2043_v36, %v1870_v44 }
 0x171   : > { %v1049_v12 = vadd.f32 %v1048_v23, %v4062_v10  ;;  %v1364_v23 = vmax.f32 %v1216_v50, 0.0 }
 0x172   : > { %v1217_v28 = vpop.f32.mrf.mxu1  ;;  %v3661_v31 = vpop.permute.xlu2 %1679  ;;  %v1976_v51 = vadd.f32 %v1975_v40, %v1871_v19  ;;  %v2045_v32 = vadd.f32 %v2044_v0, %v1872_v20 }
 0x173   : > { %v3641_v7 = vpop.permute.xlu1 %1629  ;;  %v1625_v53 = vpop.permute.xlu0 %1624  ;;  %v1218_v36 = vadd.f32 %v1217_v28, %v4062_v10  ;;  %v1365_v4 = vmax.f32 %v1049_v12, 0.0 }
 0x174   : > { %v3675_v52 = vpop.f32.mrf.mxu2  ;;  %v1873_v29 = vmul.f32 %v1625_v53, %v1361_v59  ;;  %v1874_v37 = vmul.f32 %v1625_v53, %v1362_v49  ;;  %v1875_v28 = vmul.f32 %v3641_v7, %v1363_v55  ;;  %v3703_v59 = vpop.f32.mrf.mxu3 }
 0x175   : > { %v1366_v40 = vmax.f32 %v1218_v36, 0.0  ;;  %v1877_v20 = vmul.f32 %v3627_v42, %v1365_v4 }
 0x176   : > { %v1977_v17 = vadd.f32 %v1976_v51, %v1873_v29  ;;  %v2046_v13 = vadd.f32 %v2045_v32, %v1874_v37 }
 0x178   : > { %v1051_v39 = vpop.f32.mrf.mxu0  ;;  %v1978_v19 = vadd.f32 %v1977_v17, %v1875_v28 }
 0x179   : > { %v1052_v8 = vadd.f32 %v1051_v39, %v4063_v2 }
 0x17a   : > { %v1220_v11 = vpop.f32.mrf.mxu1  ;;  %v3683_v16 = vpop.permute.xlu2 %1694  ;;  %v1979_v32 = vadd.f32 %v1978_v19, %v1877_v20 }
 0x17b   : > { %v3649_v14 = vpop.permute.xlu1 %1644  ;;  %v3651_v62 = vpop.permute.xlu0 %1639  ;;  %v1221_v54 = vadd.f32 %v1220_v11, %v4063_v2  ;;  %v1367_v41 = vmax.f32 %v1052_v8, 0.0  ;;  %v4065_v11 = vld [vmem:[#allocation21_spill] sm:$0xff] }
 0x17c   : > { %v3698_v53 = vpop.f32.mrf.mxu2 }
 0x17d   : > { %v1368_v49 = vmax.f32 %v1221_v54, 0.0 }
 0x17f   : > { %v1880_v8 = vmul.f32 %v3651_v62, %v1368_v49 }
 0x180   : > { %v1053_v3 = vpop.f32.mrf.mxu0 }
 0x181   : > { %v1054_v57 = vadd.f32 %v1053_v3, %v4064_v9  ;;  %v1876_v3 = vmul.f32 %v3641_v7, %v1364_v23  ;;  %v4067_v7 = vld [vmem:[#allocation24_spill] sm:$0xff] }
 0x182   : > { %v1222_v21 = vpop.f32.mrf.mxu1  ;;  %v3709_v10 = vpop.permute.xlu2 %1709 }
 0x183   : > { %v3657_v27 = vpop.permute.xlu1 %1659  ;;  %v3659_v43 = vpop.permute.xlu0 %1654  ;;  %v1223_v39 = vadd.f32 %v1222_v21, %v4064_v9  ;;  %v1369_v35 = vmax.f32 %v1054_v57, 0.0  ;;  %v2047_v21 = vadd.f32 %v2046_v13, %v1876_v3 }
 0x184   : > { %v3728_v3 = vpop.f32.mrf.mxu3 }
 0x185   : > { %v1370_v50 = vmax.f32 %v1223_v39, 0.0  ;;  %v1881_v54 = vmul.f32 %v3649_v14, %v1369_v35  ;;  %v3724_v39 = vpop.f32.mrf.mxu2 }
 0x188   : > { %v1056_v33 = vpop.f32.mrf.mxu0 }
 0x189   : > { %v1057_v44 = vadd.f32 %v1056_v33, %v4065_v11  ;;  %v1879_v33 = vmul.f32 %v3651_v62, %v1367_v41 }
 0x18a   : > { %v1225_v34 = vpop.f32.mrf.mxu1 }
 0x18b   : > { %v3677_v60 = vpop.permute.xlu1 %1674  ;;  %v3679_v30 = vpop.permute.xlu0 %1669  ;;  %v1226_v0 = vadd.f32 %v1225_v34, %v4065_v11  ;;  %v1371_v37 = vmax.f32 %v1057_v44, 0.0  ;;  %v1878_v34 = vmul.f32 %v3627_v42, %v1366_v40  ;;  %v1980_v4 = vadd.f32 %v1979_v32, %v1879_v33  ;;  %v4070_v32 = vld [vmem:[#allocation14_spill] sm:$0xff] }
 0x18d   : > { %v1372_v36 = vmax.f32 %v1226_v0, 0.0  ;;  %v2048_v23 = vadd.f32 %v2047_v21, %v1878_v34  ;;  %v1883_v42 = vmul.f32 %v3639_v56, %v1371_v37  ;;  %v1981_v11 = vadd.f32 %v1980_v4, %v1881_v54  ;;  %v3733_v21 = vpop.permute.xlu2 %1724 }
 0x18e   : > { %v1380_v54 = vmax.f32 %v4070_v32, 0.0  ;;  %v4078_v32 = vld [vmem:[#allocation31_spill] sm:$0xff] }
 0x18f   : > { %v2049_v28 = vadd.f32 %v2048_v23, %v1880_v8  ;;  %v1884_v41 = vmul.f32 %v3639_v56, %v1372_v36  ;;  %v1982_v19 = vadd.f32 %v1981_v11, %v1883_v42  ;;  %v4072_v42 = vld [vmem:[#allocation27_spill] sm:$0xff] }
 0x190   : > { %v1058_v46 = vpop.f32.mrf.mxu0 }
 0x191   : > { %v1059_v29 = vadd.f32 %v1058_v46, %v4066_v38 }
 0x192   : > { %v1227_v1 = vpop.f32.mrf.mxu1 }
 0x193   : > { %v3694_v24 = vpop.permute.xlu1 %1689  ;;  %v3696_v45 = vpop.permute.xlu0 %1684  ;;  %v1228_v51 = vadd.f32 %v1227_v1, %v4066_v38  ;;  %v1373_v55 = vmax.f32 %v1059_v29, 0.0  ;;  %v1882_v1 = vmul.f32 %v3649_v14, %v1370_v50  ;;  %v4068_v38 = vld [vmem:[#allocation23_spill] sm:$0xff] }
 0x195   : > { %v1374_v13 = vmax.f32 %v1228_v51, 0.0  ;;  %v1885_v44 = vmul.f32 %v3659_v43, %v1373_v55  ;;  %v2050_v49 = vadd.f32 %v2049_v28, %v1882_v1  ;;  %v4071_v55 = vld [vmem:[#allocation29_spill] sm:$0xff] }
 0x197   : > { %v1886_v14 = vmul.f32 %v3659_v43, %v1374_v13  ;;  %v2051_v20 = vadd.f32 %v2050_v49, %v1884_v41  ;;  %v1983_v56 = vadd.f32 %v1982_v19, %v1885_v44  ;;  %v1383_v13 = vmax.f32 %v4072_v42, 0.0  ;;  %v3749_v41 = vpop.f32.mrf.mxu2 }
 0x198   : > { %v1061_v12 = vpop.f32.mrf.mxu0  ;;  %v1892_v44 = vmul.f32 %v3679_v30, %v1380_v54  ;;  %v4079_v54 = vld [vmem:[#allocation34_spill] sm:$0xff] }
 0x199   : > { %v1062_v2 = vadd.f32 %v1061_v12, %v4067_v7  ;;  %v2052_v34 = vadd.f32 %v2051_v20, %v1886_v14  ;;  %v4075_v14 = vld [vmem:[#allocation28_spill] sm:$0xff] }
 0x19a   : > { %v1230_v46 = vpop.f32.mrf.mxu1 }
 0x19b   : > { %v1231_v17 = vadd.f32 %v1230_v46, %v4067_v7  ;;  %v3718_v9 = vpop.permute.xlu1 %1704  ;;  %v3720_v57 = vpop.permute.xlu0 %1699  ;;  %v1375_v62 = vmax.f32 %v1062_v2, 0.0  ;;  %v4069_v2 = vld [vmem:[#allocation13_spill] sm:$0xff] }
 0x19c   : > { %v1379_v43 = vmax.f32 %v4069_v2, 0.0 }
 0x19d   : > { %v1376_v40 = vmax.f32 %v1231_v17, 0.0  ;;  %v1887_v35 = vmul.f32 %v3657_v27, %v1375_v62  ;;  %v1381_v17 = vmax.f32 %v4071_v55, 0.0  ;;  %v4073_v62 = vld [vmem:[#allocation30_spill] sm:$0xff]  ;;  %v1388_v55 = vmax.f32 %v4079_v54, 0.0 }
 0x19e   : > { %v1382_v28 = vmax.f32 %v4073_v62, 0.0 }
 0x19f   : > { %v1888_v12 = vmul.f32 %v3657_v27, %v1376_v40  ;;  %v1984_v8 = vadd.f32 %v1983_v56, %v1887_v35  ;;  %v1891_v27 = vmul.f32 %v3679_v30, %v1379_v43  ;;  %v1893_v11 = vmul.f32 %v3677_v60, %v1381_v17  ;;  %v3765_v43 = vpop.permute.xlu2 %1739 }
 0x1a0   : > { %v1063_v0 = vpop.f32.mrf.mxu0  ;;  %v1384_v35 = vmax.f32 %v4075_v14, 0.0  ;;  %v3779_v14 = vpop.f32.mrf.mxu2 }
 0x1a1   : > { %v1064_v29 = vadd.f32 %v1063_v0, %v4068_v38  ;;  %v2053_v23 = vadd.f32 %v2052_v34, %v1888_v12  ;;  %v4074_v0 = vld [vmem:[#allocation17_spill] sm:$0xff] }
 0x1a2   : > { %v1232_v50 = vpop.f32.mrf.mxu1  ;;  %v1385_v19 = vmax.f32 %v4074_v0, 0.0  ;;  %v1896_v34 = vmul.f32 %v3661_v31, %v1384_v35  ;;  %v4083_v0 = vld [vmem:[#allocation38_spill] sm:$0xff] }
 0x1a3   : > { %v1377_v33 = vmax.f32 %v1064_v29, 0.0  ;;  %v1233_v37 = vadd.f32 %v1232_v50, %v4068_v38  ;;  %v3737_v51 = vpop.permute.xlu1 %1719  ;;  %v3739_v7 = vpop.permute.xlu0 %1714  ;;  %v1894_v29 = vmul.f32 %v3677_v60, %v1382_v28  ;;  %v1389_v60 = vmax.f32 %v4078_v32, 0.0 }
 0x1a4   : > { %v3755_v38 = vpop.f32.mrf.mxu3  ;;  %v1900_v28 = vmul.f32 %v3694_v24, %v1388_v55 }
 0x1a5   : > { %v1889_v36 = vmul.f32 %v3647_v22, %v1377_v33  ;;  %v1378_v46 = vmax.f32 %v1233_v37, 0.0  ;;  %v4076_v33 = vld [vmem:[#allocation18_spill] sm:$0xff]  ;;  %v4077_v37 = vld [vmem:[#allocation33_spill] sm:$0xff] }
 0x1a6   : > { %v1386_v30 = vmax.f32 %v4076_v33, 0.0  ;;  %v1387_v2 = vmax.f32 %v4077_v37, 0.0  ;;  %v4084_v33 = vld [vmem:[#allocation36_spill] sm:$0xff] }
 0x1a7   : > { %v1985_v1 = vadd.f32 %v1984_v8, %v1889_v36  ;;  %v1890_v4 = vmul.f32 %v3647_v22, %v1378_v46  ;;  %v1895_v22 = vmul.f32 %v3661_v31, %v1383_v13  ;;  %v1897_v8 = vmul.f32 %v3696_v45, %v1385_v19  ;;  %v4081_v13 = vld [vmem:[#allocation32_spill] sm:$0xff]  ;;  %v3795_v55 = vpop.permute.xlu2 %1754 }
 0x1a8   : > { %v1899_v17 = vmul.f32 %v3694_v24, %v1387_v2  ;;  %v1390_v62 = vmax.f32 %v4081_v13, 0.0  ;;  %v1901_v31 = vmul.f32 %v3683_v16, %v1389_v60  ;;  %v1393_v19 = vmax.f32 %v4083_v0, 0.0  ;;  %v4087_v60 = vld [vmem:[#allocation40_spill] sm:$0xff]  ;;  %v4089_v13 = vld [vmem:[#allocation43_spill] sm:$0xff] }
 0x1a9   : > { %v1986_v40 = vadd.f32 %v1985_v1, %v1891_v27  ;;  %v2054_v49 = vadd.f32 %v2053_v23, %v1890_v4  ;;  %v1898_v27 = vmul.f32 %v3696_v45, %v1386_v30  ;;  %v4080_v4 = vld [vmem:[#allocation25_spill] sm:$0xff]  ;;  %v1395_v24 = vmax.f32 %v4084_v33, 0.0  ;;  %v4085_v30 = vld [vmem:[#allocation39_spill] sm:$0xff] }
 0x1aa   : > { %v1391_v42 = vmax.f32 %v4080_v4, 0.0  ;;  %v1902_v45 = vmul.f32 %v3683_v16, %v1390_v62  ;;  %v1394_v37 = vmax.f32 %v4085_v30, 0.0  ;;  %v1397_v54 = vmax.f32 %v4087_v60, 0.0  ;;  %v4088_v4 = vld [vmem:[#allocation41_spill] sm:$0xff]  ;;  %v4092_v33 = vld [vmem:[#allocation47_spill] sm:$0xff] }
 0x1ab   : > { %v1987_v20 = vadd.f32 %v1986_v40, %v1893_v11  ;;  %v2055_v50 = vadd.f32 %v2054_v49, %v1892_v44  ;;  %v3759_v56 = vpop.permute.xlu1 %1734  ;;  %v3761_v12 = vpop.permute.xlu0 %1729  ;;  %v4082_v40 = vld [vmem:[#allocation26_spill] sm:$0xff]  ;;  %v1399_v62 = vmax.f32 %v4089_v13, 0.0  ;;  %v4097_v13 = vld [vmem:[#allocation56_spill] sm:$0xff] }
 0x1ac   : > { %v1392_v49 = vmax.f32 %v4082_v40, 0.0  ;;  %v1903_v35 = vmul.f32 %v3720_v57, %v1391_v42  ;;  %v3789_v2 = vpop.f32.mrf.mxu3  ;;  %v1398_v42 = vmax.f32 %v4088_v4, 0.0  ;;  %v4096_v4 = vld [vmem:[#allocation53_spill] sm:$0xff] }
 0x1ad   : > { %v1988_v36 = vadd.f32 %v1987_v20, %v1895_v22  ;;  %v2056_v46 = vadd.f32 %v2055_v50, %v1894_v29 }
 0x1af   : > { %v1989_v23 = vadd.f32 %v1988_v36, %v1897_v8  ;;  %v2057_v1 = vadd.f32 %v2056_v46, %v1896_v34  ;;  %v1905_v34 = vmul.f32 %v3718_v9, %v1393_v19  ;;  %v1904_v8 = vmul.f32 %v3720_v57, %v1392_v49  ;;  %v4086_v46 = vld [vmem:[#allocation37_spill] sm:$0xff]  ;;  %v4091_v49 = vld [vmem:[#allocation46_spill] sm:$0xff] }
 0x1b0   : > { %v1396_v32 = vmax.f32 %v4086_v46, 0.0  ;;  %v1401_v0 = vmax.f32 %v4091_v49, 0.0  ;;  %v1911_v19 = vmul.f32 %v3737_v51, %v1399_v62  ;;  %v4094_v46 = vld [vmem:[#allocation50_spill] sm:$0xff]  ;;  %v1407_v62 = vmax.f32 %v4097_v13, 0.0 }
 0x1b1   : > { %v2058_v11 = vadd.f32 %v2057_v1, %v1898_v27  ;;  %v1990_v44 = vadd.f32 %v1989_v23, %v1899_v17  ;;  %v1907_v17 = vmul.f32 %v3709_v10, %v1395_v24  ;;  %v1906_v27 = vmul.f32 %v3718_v9, %v1394_v37  ;;  %v4093_v24 = vld [vmem:[#allocation49_spill] sm:$0xff] }
 0x1b2   : > { %v1908_v57 = vmul.f32 %v3709_v10, %v1396_v32  ;;  %v1910_v9 = vmul.f32 %v3739_v7, %v1398_v42  ;;  %v1402_v10 = vmax.f32 %v4092_v33, 0.0  ;;  %v1403_v30 = vmax.f32 %v4093_v24, 0.0  ;;  %v4095_v32 = vld [vmem:[#allocation52_spill] sm:$0xff]  ;;  %v4100_v33 = vld [vmem:[#allocation61_spill] sm:$0xff]  ;;  %v4101_v24 = vld [vmem:[#allocation66_spill] sm:$0xff] }
 0x1b3   : > { %v1991_v22 = vadd.f32 %v1990_v44, %v1901_v31  ;;  %v2059_v29 = vadd.f32 %v2058_v11, %v1900_v28  ;;  %v3783_v20 = vpop.permute.xlu1 %1749  ;;  %v3785_v50 = vpop.permute.xlu0 %1744  ;;  %v1909_v31 = vmul.f32 %v3739_v7, %v1397_v54  ;;  %v4090_v44 = vld [vmem:[#allocation44_spill] sm:$0xff]  ;;  %v1913_v37 = vmul.f32 %v3733_v21, %v1401_v0 }
 0x1b4   : > { %v1400_v40 = vmax.f32 %v4090_v44, 0.0  ;;  %v1404_v7 = vmax.f32 %v4094_v46, 0.0  ;;  %v1405_v60 = vmax.f32 %v4095_v32, 0.0  ;;  %v1914_v54 = vmul.f32 %v3733_v21, %v1402_v10  ;;  %v4098_v44 = vld [vmem:[#allocation57_spill] sm:$0xff] }
 0x1b5   : > { %v1992_v36 = vadd.f32 %v1991_v22, %v1903_v35  ;;  %v2060_v16 = vadd.f32 %v2059_v29, %v1902_v45  ;;  %v1406_v42 = vmax.f32 %v4096_v4, 0.0  ;;  %v1408_v21 = vmax.f32 %v4098_v44, 0.0 }
 0x1b6   : > { %v1919_v0 = vmul.f32 %v3765_v43, %v1407_v62  ;;  %v1410_v10 = vmax.f32 %v4100_v33, 0.0  ;;  %v1418_v33 = vmax.f32 %v3524_v47, 0.0 }
 0x1b7   : > { %v1993_v23 = vadd.f32 %v1992_v36, %v1905_v34  ;;  %v2061_v1 = vadd.f32 %v2060_v16, %v1904_v8  ;;  %v3814_v34 = vpop.f32.mrf.mxu2  ;;  %v1912_v8 = vmul.f32 %v3737_v51, %v1400_v40  ;;  %v1917_v51 = vmul.f32 %v3759_v56, %v1405_v60  ;;  %v4099_v40 = vld [vmem:[#allocation60_spill] sm:$0xff]  ;;  %v4104_v60 = vld [vmem:[#allocation70_spill] sm:$0xff] }
 0x1b8   : > { %v1409_v49 = vmax.f32 %v4099_v40, 0.0  ;;  %v4106_v40 = vld [vmem:[#allocation42_spill] sm:$0xff] }
 0x1b9   : > { %v1994_v28 = vadd.f32 %v1993_v23, %v1907_v17  ;;  %v2062_v11 = vadd.f32 %v2061_v1, %v1906_v27  ;;  %v3820_v17 = vpop.f32.mrf.mxu3  ;;  %v1915_v23 = vmul.f32 %v3761_v12, %v1403_v30  ;;  %v1411_v30 = vmax.f32 %v4101_v24, 0.0  ;;  %v4107_v24 = vld [vmem:[#allocation55_spill] sm:$0xff] }
 0x1ba   : > { %v1921_v46 = vmul.f32 %v3785_v50, %v1409_v49  ;;  %v1119_v49 = vadd.f32 %v3643_v58, %v4106_v40  ;;  %v1291_v47 = vadd.f32 %v3655_v25, %v4107_v24 }
 0x1bb   : > { %v1995_v45 = vadd.f32 %v1994_v28, %v1909_v31  ;;  %v2063_v35 = vadd.f32 %v2062_v11, %v1908_v57  ;;  %v3807_v22 = vpop.permute.xlu1 %1764  ;;  %v3809_v29 = vpop.permute.xlu0 %1759  ;;  %v1916_v31 = vmul.f32 %v3761_v12, %v1404_v7 }
 0x1bc   : > { %v3825_v57 = vpop.permute.xlu2 %1769 }
 0x1bd   : > { %v1996_v36 = vadd.f32 %v1995_v45, %v1911_v19  ;;  %v2064_v16 = vadd.f32 %v2063_v35, %v1910_v9  ;;  %v1918_v19 = vmul.f32 %v3759_v56, %v1406_v42  ;;  %v4103_v56 = vld [vmem:[#allocation67_spill] sm:$0xff] }
 0x1be   : > { %v1412_v32 = vmax.f32 %v4103_v56, 0.0 }
 0x1bf   : > { %v2065_v27 = vadd.f32 %v2064_v16, %v1912_v8  ;;  %v1997_v1 = vadd.f32 %v1996_v36, %v1913_v37  ;;  %v4102_v37 = vld [vmem:[#allocation35_spill] sm:$0xff]  ;;  %v1920_v36 = vmul.f32 %v3765_v43, %v1408_v21  ;;  %v1417_v21 = vmax.f32 %v3518_v61, 0.0 }
 0x1c0   : > { %v1112_v12 = vadd.f32 %v3485_v26, %v4102_v37  ;;  %v1922_v26 = vmul.f32 %v3785_v50, %v1410_v10  ;;  %v4105_v43 = vld [vmem:[#allocation71_spill] sm:$0xff]  ;;  %v1419_v10 = vmax.f32 %v3555_v6, 0.0  ;;  %v1122_v61 = vadd.f32 %v3653_v18, %v4107_v24  ;;  %v4108_v6 = vld [vmem:[#allocation54_spill] sm:$0xff] }
 0x1c1   : > { %v1998_v28 = vadd.f32 %v1997_v1, %v1915_v23  ;;  %v2066_v11 = vadd.f32 %v2065_v27, %v1914_v54  ;;  %v1413_v54 = vmax.f32 %v4104_v60, 0.0  ;;  %v1281_v27 = vadd.f32 %v3489_v63, %v4102_v37  ;;  %v3847_v23 = vpop.f32.mrf.mxu2 }
 0x1c2   : > { %v1923_v1 = vmul.f32 %v3783_v20, %v1411_v30  ;;  %v1414_v13 = vmax.f32 %v4105_v43, 0.0  ;;  %v1415_v62 = vmax.f32 %v1112_v12, 0.0  ;;  %v1929_v58 = vmul.f32 %v3807_v22, %v1417_v21  ;;  %v4111_v21 = vld [vmem:[#allocation58_spill] sm:$0xff] }
 0x1c3   : > { %v1999_v9 = vadd.f32 %v1998_v28, %v1917_v51  ;;  %v2067_v45 = vadd.f32 %v2066_v11, %v1916_v31  ;;  %v3833_v35 = vpop.permute.xlu0 %1774  ;;  %v3839_v8 = vpop.permute.xlu1 %1779  ;;  %v1925_v31 = vmul.f32 %v3795_v55, %v1413_v54  ;;  %v1924_v28 = vmul.f32 %v3783_v20, %v1412_v32 }
 0x1c4   : > { %v3852_v51 = vpop.f32.mrf.mxu3  ;;  %v1416_v63 = vmax.f32 %v1281_v27, 0.0  ;;  %v1785_v50 = vpop.permute.xlu2 %1784  ;;  %v1288_v20 = vadd.f32 %v3645_v5, %v4106_v40  ;;  %v1930_v18 = vmul.f32 %v3807_v22, %v1418_v33  ;;  %v1293_v54 = vadd.f32 %v3681_v15, %v4108_v6  ;;  %v4112_v33 = vld [vmem:[#allocation48_spill] sm:$0xff] }
 0x1c5   : > { %v2068_v16 = vadd.f32 %v2067_v45, %v1918_v19  ;;  %v2000_v7 = vadd.f32 %v1999_v9, %v1919_v0  ;;  %v1926_v0 = vmul.f32 %v3795_v55, %v1414_v13  ;;  %v1927_v9 = vmul.f32 %v3809_v29, %v1415_v62  ;;  %v4110_v13 = vld [vmem:[#allocation59_spill] sm:$0xff] }
 0x1c6   : > { %v1928_v37 = vmul.f32 %v3809_v29, %v1416_v63  ;;  %v1422_v60 = vmax.f32 %v1288_v20, 0.0  ;;  %v1423_v29 = vmax.f32 %v1122_v61, 0.0  ;;  %v1129_v62 = vadd.f32 %v3724_v39, %v4110_v13 }
 0x1c7   : > { %v2001_v4 = vadd.f32 %v2000_v7, %v1921_v46  ;;  %v2069_v42 = vadd.f32 %v2068_v16, %v1920_v36  ;;  %v1420_v36 = vmax.f32 %v3562_v48, 0.0  ;;  %v1421_v16 = vmax.f32 %v1119_v49, 0.0  ;;  %v4109_v48 = vld [vmem:[#allocation45_spill] sm:$0xff] }
 0x1c8   : > { %v1124_v46 = vadd.f32 %v3675_v52, %v4108_v6  ;;  %v1931_v7 = vmul.f32 %v3825_v57, %v1419_v10  ;;  %v1127_v27 = vadd.f32 %v3698_v53, %v4109_v48  ;;  %v1296_v22 = vadd.f32 %v3703_v59, %v4109_v48  ;;  %v4115_v48 = vld [vmem:[#allocation51_spill] sm:$0xff] }
 0x1c9   : > { %v2002_v11 = vadd.f32 %v2001_v4, %v1923_v1  ;;  %v2070_v44 = vadd.f32 %v2069_v42, %v1922_v26  ;;  %v1141_v1 = vpop.f32.mrf.mxu2  ;;  %v1932_v25 = vmul.f32 %v3825_v57, %v1420_v36  ;;  %v1933_v52 = vmul.f32 %v3833_v35, %v1421_v16 }
 0x1ca   : > { %v1424_v42 = vmax.f32 %v1291_v47, 0.0  ;;  %v1425_v43 = vmax.f32 %v1124_v46, 0.0  ;;  %v1935_v15 = vmul.f32 %v3839_v8, %v1423_v29  ;;  %v1934_v53 = vmul.f32 %v3833_v35, %v1422_v60 }
 0x1cb   : > { %v2071_v19 = vadd.f32 %v2070_v44, %v1924_v28  ;;  %v2003_v45 = vadd.f32 %v2002_v11, %v1925_v31  ;;  %v1790_v30 = vpop.permute.xlu0 %1789  ;;  %v1795_v5 = vpop.permute.xlu1 %1794  ;;  %v1426_v57 = vmax.f32 %v1293_v54, 0.0  ;;  %v1427_v44 = vmax.f32 %v1127_v27, 0.0 }
 0x1cc   : > { %v1310_v31 = vpop.f32.mrf.mxu3  ;;  %v1298_v63 = vadd.f32 %v3728_v3, %v4110_v13  ;;  %v1132_v40 = vadd.f32 %v3749_v41, %v4111_v21  ;;  %v1800_v49 = vpop.permute.xlu2 %1799  ;;  %v1937_v59 = vmul.f32 %v1785_v50, %v1425_v43  ;;  %v1301_v35 = vadd.f32 %v3755_v38, %v4111_v21 }
 0x1cd   : > { %v2004_v55 = vadd.f32 %v2003_v45, %v1927_v9  ;;  %v2072_v12 = vadd.f32 %v2071_v19, %v1926_v0  ;;  %v1936_v0 = vmul.f32 %v3839_v8, %v1424_v42  ;;  %v1428_v9 = vmax.f32 %v1296_v22, 0.0  ;;  %v4116_v22 = vld [vmem:[#allocation68_spill] sm:$0xff] }
 0x1ce   : > { %v1429_v45 = vmax.f32 %v1129_v62, 0.0  ;;  %v1134_v10 = vadd.f32 %v3779_v14, %v4112_v33  ;;  %v1938_v24 = vmul.f32 %v1785_v50, %v1426_v57  ;;  %v1939_v61 = vmul.f32 %v1790_v30, %v1427_v44 }
 0x1cf   : > { %v2005_v56 = vadd.f32 %v2004_v55, %v1929_v58  ;;  %v2073_v32 = vadd.f32 %v2072_v12, %v1928_v37  ;;  %v1430_v41 = vmax.f32 %v1298_v63, 0.0  ;;  %v1431_v37 = vmax.f32 %v1132_v40, 0.0  ;;  %v4113_v55 = vld [vmem:[#allocation64_spill] sm:$0xff] }
 0x1d0   : > { %v1303_v8 = vadd.f32 %v3789_v2, %v4112_v33  ;;  %v1137_v12 = vadd.f32 %v3814_v34, %v4113_v55  ;;  %v1941_v16 = vmul.f32 %v1795_v5, %v1429_v45  ;;  %v1940_v47 = vmul.f32 %v1790_v30, %v1428_v9 }
 0x1d1   : > { %v2074_v26 = vadd.f32 %v2073_v32, %v1930_v18  ;;  %v2006_v4 = vadd.f32 %v2005_v56, %v1931_v7  ;;  %v1432_v46 = vmax.f32 %v1301_v35, 0.0  ;;  %v1433_v14 = vmax.f32 %v1134_v10, 0.0  ;;  %v4114_v7 = vld [vmem:[#allocation63_spill] sm:$0xff]  ;;  %v1143_v56 = vpop.f32.mrf.mxu2 }
 0x1d2   : > { %v1306_v50 = vadd.f32 %v3820_v17, %v4113_v55  ;;  %v1139_v18 = vadd.f32 %v3847_v23, %v4114_v7  ;;  %v1943_v32 = vmul.f32 %v1800_v49, %v1431_v37  ;;  %v1942_v60 = vmul.f32 %v1795_v5, %v1430_v41 }
 0x1d3   : > { %v2007_v28 = vadd.f32 %v2006_v4, %v1933_v52  ;;  %v2075_v11 = vadd.f32 %v2074_v26, %v1932_v25  ;;  %v1805_v20 = vpop.permute.xlu0 %1804  ;;  %v1810_v36 = vpop.permute.xlu1 %1809  ;;  %v1434_v54 = vmax.f32 %v1303_v8, 0.0  ;;  %v1435_v34 = vmax.f32 %v1137_v12, 0.0 }
 0x1d4   : > { %v1308_v30 = vadd.f32 %v3852_v51, %v4114_v7  ;;  %v1142_v27 = vadd.f32 %v1141_v1, %v4115_v48  ;;  %v1312_v25 = vpop.f32.mrf.mxu3  ;;  %v1944_v26 = vmul.f32 %v1800_v49, %v1432_v46  ;;  %v1945_v4 = vmul.f32 %v1805_v20, %v1433_v14  ;;  %v1815_v13 = vpop.permute.xlu2 %1814 }
 0x1d5   : > { %v2008_v39 = vadd.f32 %v2007_v28, %v1935_v15  ;;  %v2076_v19 = vadd.f32 %v2075_v11, %v1934_v53  ;;  %v1436_v42 = vmax.f32 %v1306_v50, 0.0  ;;  %v1437_v43 = vmax.f32 %v1139_v18, 0.0 }
 0x1d6   : > { %v1311_v23 = vadd.f32 %v1310_v31, %v4115_v48  ;;  %v1144_v5 = vadd.f32 %v1143_v56, %v4116_v22  ;;  %v1947_v62 = vmul.f32 %v1810_v36, %v1435_v34  ;;  %v1946_v15 = vmul.f32 %v1805_v20, %v1434_v54 }
 0x1d7   : > { %v2077_v3 = vadd.f32 %v2076_v19, %v1936_v0  ;;  %v2009_v58 = vadd.f32 %v2008_v39, %v1937_v59  ;;  %v1438_v11 = vmax.f32 %v1308_v30, 0.0  ;;  %v1439_v51 = vmax.f32 %v1142_v27, 0.0 }
 0x1d8   : > { %v1313_v1 = vadd.f32 %v1312_v25, %v4116_v22  ;;  %v1949_v44 = vmul.f32 %v1815_v13, %v1437_v43  ;;  %v1948_v63 = vmul.f32 %v1810_v36, %v1436_v42  ;;  %v1440_v49 = vmax.f32 %v1311_v23, 0.0 }
 0x1d9   : > { %v2010_v38 = vadd.f32 %v2009_v58, %v1939_v61  ;;  %v2078_v6 = vadd.f32 %v2077_v3, %v1938_v24  ;;  %v1441_v59 = vmax.f32 %v1144_v5, 0.0  ;;  %v1950_v31 = vmul.f32 %v1815_v13, %v1438_v11 }
 0x1da   : > { %v1442_v45 = vmax.f32 %v1313_v1, 0.0  ;;  %v2094_v46 = vstv %s2093_s13  ;;  %v2103_v7 = vlaneseq }
 0x1db   : > { %v2011_v2 = vadd.f32 %v2010_v38, %v1941_v16  ;;  %v2079_v29 = vadd.f32 %v2078_v6, %v1940_v47  ;;  %v1820_v57 = vpop.permute.xlu0 %1819  ;;  %v1825_v0 = vpop.permute.xlu1 %1824 }
 0x1dc   : > { %v1951_v19 = vmul.f32 %v1820_v57, %v1439_v51  ;;  %v1953_v35 = vmul.f32 %v1825_v0, %v1441_v59  ;;  %v1952_v33 = vmul.f32 %v1820_v57, %v1440_v49  ;;  %v1954_v24 = vmul.f32 %v1825_v0, %v1442_v45 }
 0x1dd   : > { %v2080_v52 = vadd.f32 %v2079_v29, %v1942_v60  ;;  %v2012_v17 = vadd.f32 %v2011_v2, %v1943_v32  ;;  %vm2105_vm3 = vcmp.lt.s32.totalorder %v2103_v7, 256 }
 0x1df   : > { %v2013_v53 = vadd.f32 %v2012_v17, %v1945_v4  ;;  %v2081_v28 = vadd.f32 %v2080_v52, %v1944_v26 }
 0x1e1   : > { %v2014_v21 = vadd.f32 %v2013_v53, %v1947_v62  ;;  %v2082_v40 = vadd.f32 %v2081_v28, %v1946_v15 }
 0x1e3   : > { %v2083_v39 = vadd.f32 %v2082_v40, %v1948_v63  ;;  %v2015_v9 = vadd.f32 %v2014_v21, %v1949_v44 }
 0x1e5   : > { %v2016_v10 = vadd.f32 %v2015_v9, %v1951_v19  ;;  %v2084_v20 = vadd.f32 %v2083_v39, %v1950_v31 }
 0x1e7   : > { %v2017_v3 = vadd.f32 %v2016_v10, %v1953_v35  ;;  %v2085_v61 = vadd.f32 %v2084_v20, %v1952_v33 }
 0x1e9   : > { %v2018_v58 = vrot.slane %v2017_v3, 4  ;;  %v2086_v41 = vadd.f32 %v2085_v61, %v1954_v24 }
 0x1eb   : > { %v2019_v37 = vadd.f32 %v2018_v58, %v2017_v3  ;;  %v2087_v8 = vrot.slane %v2086_v41, 4 }
 0x1ed   : > { %v2020_v55 = vrot.slane %v2019_v37, 2  ;;  %v2088_v12 = vadd.f32 %v2087_v8, %v2086_v41 }
 0x1ef   : > { %v2021_v36 = vadd.f32 %v2020_v55, %v2019_v37  ;;  %v2089_v16 = vrot.slane %v2088_v12, 2 }
 0x1f1   : > { %v2022_v47 = vrot.slane %v2021_v36, 1  ;;  %v2090_v38 = vadd.f32 %v2089_v16, %v2088_v12 }
 0x1f3   : > { %v2091_v6 = vrot.slane %v2090_v38, 1  ;;  %v2023_v14 = vadd.f32 %v2022_v47, %v2021_v36 }
 0x1f5   : > { %v2092_v50 = vadd.f32 %v2091_v6, %v2090_v38  ;;  %v2095_v56 = vadd.f32 %v2094_v46, %v2023_v14 }
 0x1f7   : > { %v2096_v18 = vadd.f32 %v2094_v46, %v2092_v50 }
 0x1f9   : > { %v2099_v32 = vrot.slane %v2096_v18, 7 }
 0x1fb   : > { %v2101_v60 = vsel %vm2100_vm2, %v2095_v56, %v2099_v32 }
 0x1fc   : > { %2107 = vst.msk [vmem:[%s243_s4] sm:$0x3] %vm2105_vm3, %v2101_v60 }
 0x1fd   : > { %2526 = shalt.err (!%p2523_p5)
}
 0x1fe   : > { %2440 = dma.vmem_to_hbm [thread:$0]  (%p2653_p4), %s2124_s26, 32, %s2126_s28, %s2109_s23  }
 0x1ff PF: > { %p2446_p6 = scmp.ge.s32.totalorder %s2577_s25, 2  ;;  %s2137_s14 = sand.u32 1, %s2557_s20  }
 0x200   : > { %s2138_s15 = scalar_lea.sflag [#allocation4], %s2137_s14 }
 0x201   : > { %p2443_p7 = pnand %p2446_p6, %p2660_p8 }
 0x203   : > { %p2444_p9 = pneg %p2443_p7 }
 0x205   : > { %2552 = dma.done.wait (%p2444_p9), %s2138_s15, 32  }
 0x206   : > { %2554 = vsyncadd (%p2444_p9), %s2138_s15, 4294967264  ;;  %s19_s25 = sadd.s32 1, %s2577_s25   ;;  %s4117_s20 = smov %s2561_s21 }
 0x207   : > { %p16_p10 = scmp.ge.s32.totalorder %s19_s25, 4   ;;  %s4118_s21 = smov %s2565_s22 }
 0x208   : > { %s4119_s22 = smov %s2666_s7  ;;  %s4120_s23 = smov %s2573_s24 }
 0x209   : > { %s4121_s24 = smov %s4123_s27  ;;  %18 = sbr.rel (!%p16_p10) target bundleno = 6 (0x6), region = 75 }
 0x20e   :  { %2144 = vsyncpa [#allocation4], 1 }
 0x20f   :  { %2146 = vsyncpa [#allocation4 + $0x1], 1 }

</bundles_post_ra>
